<compile_context>
chip_gen: v7x
topology: tpu7x:2x2x1
jax: 0.10.0
libtpu: 0.0.40
codegen_flags: <defaults>
</compile_context>

<pallas_src>
import functools

import jax
import jax.numpy as jnp
from jax.experimental import pallas as pl
from jax.experimental.pallas import tpu as pltpu

# ---- model config (small test shapes consistent with the module) -----------
INPUT_DIM = 4      # len(X_train.columns) stand-in
HIDDEN_DIM = 32    # hidden_dim
LAYER_DIM = 3      # layer_dim
OUTPUT_DIM = 1     # output_dim
BATCH = 2
SEQ = 8


def gru_model_kernel(x_ref,
                     wih0, whh0, b0,
                     wih1, whh1, b1,
                     wih2, whh2, b2,
                     fcw, fcb,
                     out_ref,
                     gi0_ref,
                     *, T, Bp, H, L):
    """Wavefronted 3-layer GRU + fc head.

    x_ref:   (T*Bp, D_in)  time-major flattened input sequence
    wih_l:   (D_in_l, 3H)  fused per-gate input weights, columns [r | z | n]
    whh_l:   (H, 3H)       fused per-gate recurrent weights
    b_l:     (1, 4H)       [b_ir+b_hr | b_iz+b_hz | b_in | b_hn]  (128 lanes)
    gi0_ref: (T*Bp, 3H)    scratch for the hoisted layer-0 input projection
    """
    H2, H3 = 2 * H, 3 * H

    # Hoisted, fused layer-0 input projection: one bulk (T*Bp,D)@(D,3H) matmul.
    gi0_ref[...] = (jnp.dot(x_ref[...], wih0[...],
                            preferred_element_type=jnp.float32)
                    + b0[:, :H3])

    # Loop-invariant per-layer weights / biases, loaded & broadcast once.
    whh = [whh0[...], whh1[...], whh2[...]]
    wih = [None, wih1[...], wih2[...]]
    bias = [b0[...], b1[...], b2[...]]
    b_gi = [None] + [jnp.broadcast_to(bias[l][:, :H3], (Bp, H3))
                     for l in range(1, L)]
    b_hn = [jnp.broadcast_to(bias[l][:, H3:], (Bp, H)) for l in range(L)]

    h = [jnp.zeros((Bp, H), jnp.float32) for _ in range(L)]
    # pipe[l] holds layer l's output from the previous wavefront step; it is
    # consumed by layer l+1 exactly one step later.
    pipe = [None] * L

    # Wavefront over (layer, time): at step s, layer l processes t = s - l.
    # Fully unrolled (T, L static) so h/pipe stay in vregs and every slice is
    # static & sublane-aligned (Bp == 8).
    for s in range(T + L - 1):
        new_pipe = list(pipe)
        for l in range(L):
            t = s - l
            if not (0 <= t < T):
                continue
            if l == 0:
                gi = gi0_ref[pl.ds(t * Bp, Bp), :]              # (Bp, 3H)
            else:
                gi = jnp.dot(pipe[l - 1], wih[l],
                             preferred_element_type=jnp.float32) + b_gi[l]
            gh = jnp.dot(h[l], whh[l],
                         preferred_element_type=jnp.float32)    # (Bp, 3H)
            rz = jax.nn.sigmoid(gi[:, :H2] + gh[:, :H2])        # one EUP push
            r = rz[:, :H]
            z = rz[:, H:]
            n = jnp.tanh(gi[:, H2:] + r * (gh[:, H2:] + b_hn[l]))
            h_new = n + z * (h[l] - n)                          # (1-z)n + z*h
            h[l] = h_new
            new_pipe[l] = h_new
        pipe = new_pipe

    # fc head on the last layer's final hidden state (== out[:, -1, :] @ fc).
    out_ref[...] = jnp.dot(h[L - 1], fcw[...],
                           preferred_element_type=jnp.float32) + fcb[...]


def gru_model_forward(x_btd, kparams):
    """x_btd: (B, T, INPUT_DIM) float32, PyTorch batch_first convention."""
    B, T, D = x_btd.shape
    Bp = max(8, -(-B // 8) * 8)                       # pad batch to sublane count
    x_pad = jnp.pad(x_btd, ((0, Bp - B), (0, 0), (0, 0)))
    x_flat = jnp.transpose(x_pad, (1, 0, 2)).reshape(T * Bp, D)  # time-major slab

    inputs = [x_flat]
    for l in range(LAYER_DIM):
        p = kparams[f"layer{l}"]
        inputs += [p["wih"], p["whh"], p["bias"]]
    inputs += [kparams["fc_w_t"], kparams["fc_b"]]

    kernel = functools.partial(gru_model_kernel, T=T, Bp=Bp, H=HIDDEN_DIM,
                               L=LAYER_DIM)

    out_pad = pl.pallas_call(
        kernel,
        out_shape=jax.ShapeDtypeStruct((Bp, OUTPUT_DIM), jnp.float32),
        in_specs=[pl.BlockSpec(memory_space=pltpu.MemorySpace.VMEM)]
        * len(inputs),
        out_specs=pl.BlockSpec(memory_space=pltpu.MemorySpace.VMEM),
        scratch_shapes=[
            pltpu.VMEM((T * Bp, 3 * HIDDEN_DIM), jnp.float32),  # hoisted gi0
        ],
    )(*inputs)
    return out_pad[:B]


def init_params(key):
    """Deterministic uniform(-1/sqrt(H), 1/sqrt(H)) init, PyTorch-style layout."""
    H = HIDDEN_DIM
    bound = 1.0 / float(H) ** 0.5
    keys = jax.random.split(key, LAYER_DIM * 4 + 2)
    ki = 0
    raw = {}
    for l in range(LAYER_DIM):
        d_in = INPUT_DIM if l == 0 else H
        wih = jax.random.uniform(keys[ki], (3 * H, d_in), jnp.float32,
                                 -bound, bound); ki += 1
        whh = jax.random.uniform(keys[ki], (3 * H, H), jnp.float32,
                                 -bound, bound); ki += 1
        bih = jax.random.uniform(keys[ki], (3 * H,), jnp.float32,
                                 -bound, bound); ki += 1
        bhh = jax.random.uniform(keys[ki], (3 * H,), jnp.float32,
                                 -bound, bound); ki += 1
        raw[f"layer{l}"] = dict(wih=wih, whh=whh, bih=bih, bhh=bhh)
    fcw = jax.random.uniform(keys[ki], (OUTPUT_DIM, H), jnp.float32,
                             -bound, bound); ki += 1
    fcb = jax.random.uniform(keys[ki], (OUTPUT_DIM,), jnp.float32,
                             -bound, bound)
    raw["fc_w"] = fcw
    raw["fc_b"] = fcb
    return raw


def prepare_kernel_params(raw):
    """Re-layout PyTorch-style GRU weights for the kernel:
       - W_ih / W_hh transposed so the 3 gates are column-concatenated [r|z|n]
         (one fused 96-lane matmul per projection)
       - biases packed into a single 128-lane row:
         [b_ir+b_hr | b_iz+b_hz | b_in | b_hn]
         (b_hh_r / b_hh_z folded; b_hh_n stays separate for r*(W_hn h + b_hn))
    """
    H = HIDDEN_DIM
    kp = {}
    for l in range(LAYER_DIM):
        p = raw[f"layer{l}"]
        bih, bhh = p["bih"], p["bhh"]
        bias = jnp.concatenate([
            bih[:2 * H] + bhh[:2 * H],   # folded r, z totals
            bih[2 * H:],                 # b_in
            bhh[2 * H:],                 # b_hn (applied inside r*(...))
        ]).reshape(1, 4 * H)
        kp[f"layer{l}"] = dict(
            wih=p["wih"].T,              # (D_in, 3H), columns [r|z|n]
            whh=p["whh"].T,              # (H, 3H)
            bias=bias,                   # (1, 4H) == (1, 128)
        )
    kp["fc_w_t"] = raw["fc_w"].T                          # (H, OUT)
    kp["fc_b"] = raw["fc_b"].reshape(1, OUTPUT_DIM)
    return kp


def reference_forward(x_btd, raw):
    """Pure-JAX reference mirroring torch.nn.GRU (gate order r,z,n) + fc."""
    B, T, _ = x_btd.shape
    H = HIDDEN_DIM
    seq = x_btd
    for l in range(LAYER_DIM):
        p = raw[f"layer{l}"]
        wih_t, whh_t = p["wih"].T, p["whh"].T
        bih, bhh = p["bih"], p["bhh"]
        h = jnp.zeros((B, H), jnp.float32)
        outs = []
        for t in range(T):
            x_t = seq[:, t, :]
            gi = x_t @ wih_t + bih
            gh = h @ whh_t + bhh
            r = jax.nn.sigmoid(gi[:, :H] + gh[:, :H])
            z = jax.nn.sigmoid(gi[:, H:2 * H] + gh[:, H:2 * H])
            n = jnp.tanh(gi[:, 2 * H:] + r * gh[:, 2 * H:])
            h = (1.0 - z) * n + z * h
            outs.append(h)
        seq = jnp.stack(outs, axis=1)
    return seq[:, -1, :] @ raw["fc_w"].T + raw["fc_b"].reshape(1, OUTPUT_DIM)


if __name__ == "__main__":
    key = jax.random.PRNGKey(0)
    k_x, k_p = jax.random.split(key)
    x = jax.random.normal(k_x, (BATCH, SEQ, INPUT_DIM), jnp.float32)
    raw_params = init_params(k_p)
    kparams = prepare_kernel_params(raw_params)

    out = gru_model_forward(x, kparams)
    out = jax.block_until_ready(out)

    ref = reference_forward(x, raw_params)
    assert out.shape == (BATCH, OUTPUT_DIM), out.shape
    assert jnp.allclose(out, ref, atol=1e-3, rtol=1e-3), (out, ref)
    print("KERNEL_OK")
</pallas_src>

<mosaic_0001>
module attributes {stable_mosaic.version = 11 : i64} {
  func.func @gru_model_kernel(%arg0: memref<64x4xf32, #tpu.memory_space<vmem>>, %arg1: memref<4x96xf32, #tpu.memory_space<vmem>>, %arg2: memref<32x96xf32, #tpu.memory_space<vmem>>, %arg3: memref<1x128xf32, #tpu.memory_space<vmem>>, %arg4: memref<32x96xf32, #tpu.memory_space<vmem>>, %arg5: memref<32x96xf32, #tpu.memory_space<vmem>>, %arg6: memref<1x128xf32, #tpu.memory_space<vmem>>, %arg7: memref<32x96xf32, #tpu.memory_space<vmem>>, %arg8: memref<32x96xf32, #tpu.memory_space<vmem>>, %arg9: memref<1x128xf32, #tpu.memory_space<vmem>>, %arg10: memref<32x1xf32, #tpu.memory_space<vmem>>, %arg11: memref<1x1xf32, #tpu.memory_space<vmem>>, %arg12: memref<8x1xf32, #tpu.memory_space<vmem>>, %arg13: memref<64x96xf32, #tpu.memory_space<vmem>>) attributes {dimension_semantics = [], scalar_prefetch = 0 : i64, scratch_operands = 1 : i64, tpu.core_type = #tpu.core_type<tc>} {
    %c0 = arith.constant 0 : index
    %c0_0 = arith.constant 0 : index
    %0 = vector.load %arg0[%c0, %c0_0] : memref<64x4xf32, #tpu.memory_space<vmem>>, vector<64x4xf32>
    %c0_1 = arith.constant 0 : index
    %c0_2 = arith.constant 0 : index
    %1 = vector.load %arg1[%c0_1, %c0_2] : memref<4x96xf32, #tpu.memory_space<vmem>>, vector<4x96xf32>
    %cst = arith.constant dense<0.000000e+00> : vector<64x96xf32>
    %2 = tpu.matmul %0, %1, %cst {dimension_numbers = #tpu.dot_dimension_numbers<[1], [0], [0], [1], [0, 0, 1, 1], [], []>} : vector<64x4xf32>, vector<4x96xf32>, vector<64x96xf32> -> vector<64x96xf32>
    %c0_3 = arith.constant 0 : index
    %c0_4 = arith.constant 0 : index
    %3 = vector.load %arg3[%c0_3, %c0_4] : memref<1x128xf32, #tpu.memory_space<vmem>>, vector<1x96xf32>
    %4 = vector.broadcast %3 : vector<1x96xf32> to vector<64x96xf32>
    %5 = arith.addf %2, %4 : vector<64x96xf32>
    %c0_5 = arith.constant 0 : index
    %c0_6 = arith.constant 0 : index
    %6 = vector.load %arg13[%c0_5, %c0_6] : memref<64x96xf32, #tpu.memory_space<vmem>>, vector<64x96xf32>
    tpu.vector_store %arg13[%c0_5, %c0_6], %5 {strides = array<i32>} : memref<64x96xf32, #tpu.memory_space<vmem>>, vector<64x96xf32>,
    %c0_7 = arith.constant 0 : index
    %c0_8 = arith.constant 0 : index
    %7 = vector.load %arg2[%c0_7, %c0_8] : memref<32x96xf32, #tpu.memory_space<vmem>>, vector<32x96xf32>
    %c0_9 = arith.constant 0 : index
    %c0_10 = arith.constant 0 : index
    %8 = vector.load %arg5[%c0_9, %c0_10] : memref<32x96xf32, #tpu.memory_space<vmem>>, vector<32x96xf32>
    %c0_11 = arith.constant 0 : index
    %c0_12 = arith.constant 0 : index
    %9 = vector.load %arg8[%c0_11, %c0_12] : memref<32x96xf32, #tpu.memory_space<vmem>>, vector<32x96xf32>
    %c0_13 = arith.constant 0 : index
    %c0_14 = arith.constant 0 : index
    %10 = vector.load %arg4[%c0_13, %c0_14] : memref<32x96xf32, #tpu.memory_space<vmem>>, vector<32x96xf32>
    %c0_15 = arith.constant 0 : index
    %c0_16 = arith.constant 0 : index
    %11 = vector.load %arg7[%c0_15, %c0_16] : memref<32x96xf32, #tpu.memory_space<vmem>>, vector<32x96xf32>
    %c0_17 = arith.constant 0 : index
    %c0_18 = arith.constant 0 : index
    %12 = vector.load %arg3[%c0_17, %c0_18] : memref<1x128xf32, #tpu.memory_space<vmem>>, vector<1x128xf32>
    %c0_19 = arith.constant 0 : index
    %c0_20 = arith.constant 0 : index
    %13 = vector.load %arg6[%c0_19, %c0_20] : memref<1x128xf32, #tpu.memory_space<vmem>>, vector<1x128xf32>
    %c0_21 = arith.constant 0 : index
    %c0_22 = arith.constant 0 : index
    %14 = vector.load %arg9[%c0_21, %c0_22] : memref<1x128xf32, #tpu.memory_space<vmem>>, vector<1x128xf32>
    %15 = vector.extract_strided_slice %13 {offsets = [0, 0], sizes = [1, 96], strides = [1, 1]} : vector<1x128xf32> to vector<1x96xf32>
    %16 = vector.shape_cast %15 : vector<1x96xf32> to vector<1x96xf32>
    %17 = vector.broadcast %16 : vector<1x96xf32> to vector<8x96xf32>
    %18 = vector.extract_strided_slice %14 {offsets = [0, 0], sizes = [1, 96], strides = [1, 1]} : vector<1x128xf32> to vector<1x96xf32>
    %19 = vector.shape_cast %18 : vector<1x96xf32> to vector<1x96xf32>
    %20 = vector.broadcast %19 : vector<1x96xf32> to vector<8x96xf32>
    %21 = vector.extract_strided_slice %12 {offsets = [0, 96], sizes = [1, 32], strides = [1, 1]} : vector<1x128xf32> to vector<1x32xf32>
    %22 = vector.shape_cast %21 : vector<1x32xf32> to vector<1x32xf32>
    %23 = vector.broadcast %22 : vector<1x32xf32> to vector<8x32xf32>
    %24 = vector.extract_strided_slice %13 {offsets = [0, 96], sizes = [1, 32], strides = [1, 1]} : vector<1x128xf32> to vector<1x32xf32>
    %25 = vector.shape_cast %24 : vector<1x32xf32> to vector<1x32xf32>
    %26 = vector.broadcast %25 : vector<1x32xf32> to vector<8x32xf32>
    %27 = vector.extract_strided_slice %14 {offsets = [0, 96], sizes = [1, 32], strides = [1, 1]} : vector<1x128xf32> to vector<1x32xf32>
    %28 = vector.shape_cast %27 : vector<1x32xf32> to vector<1x32xf32>
    %29 = vector.broadcast %28 : vector<1x32xf32> to vector<8x32xf32>
    %cst_23 = arith.constant 0.000000e+00 : f32
    %30 = vector.broadcast %cst_23 : f32 to vector<8x32xf32>
    %cst_24 = arith.constant 0.000000e+00 : f32
    %31 = vector.broadcast %cst_24 : f32 to vector<8x32xf32>
    %cst_25 = arith.constant 0.000000e+00 : f32
    %32 = vector.broadcast %cst_25 : f32 to vector<8x32xf32>
    %c0_26 = arith.constant 0 : index
    %c0_27 = arith.constant 0 : index
    %33 = vector.load %arg13[%c0_26, %c0_27] : memref<64x96xf32, #tpu.memory_space<vmem>>, vector<8x96xf32>
    %cst_28 = arith.constant dense<0.000000e+00> : vector<8x96xf32>
    %34 = tpu.matmul %30, %7, %cst_28 {dimension_numbers = #tpu.dot_dimension_numbers<[1], [0], [0], [1], [0, 0, 1, 1], [], []>} : vector<8x32xf32>, vector<32x96xf32>, vector<8x96xf32> -> vector<8x96xf32>
    %35 = vector.extract_strided_slice %33 {offsets = [0, 0], sizes = [8, 64], strides = [1, 1]} : vector<8x96xf32> to vector<8x64xf32>
    %36 = vector.extract_strided_slice %34 {offsets = [0, 0], sizes = [8, 64], strides = [1, 1]} : vector<8x96xf32> to vector<8x64xf32>
    %37 = arith.addf %35, %36 : vector<8x64xf32>
    %38 = arith.negf %37 : vector<8x64xf32>
    %39 = math.exp %38 : vector<8x64xf32>
    %cst_29 = arith.constant 1.000000e+00 : f32
    %40 = vector.broadcast %cst_29 : f32 to vector<8x64xf32>
    %41 = arith.addf %40, %39 : vector<8x64xf32>
    %42 = arith.divf %40, %41 : vector<8x64xf32>
    %43 = vector.extract_strided_slice %42 {offsets = [0, 0], sizes = [8, 32], strides = [1, 1]} : vector<8x64xf32> to vector<8x32xf32>
    %44 = vector.extract_strided_slice %42 {offsets = [0, 32], sizes = [8, 32], strides = [1, 1]} : vector<8x64xf32> to vector<8x32xf32>
    %45 = vector.extract_strided_slice %33 {offsets = [0, 64], sizes = [8, 32], strides = [1, 1]} : vector<8x96xf32> to vector<8x32xf32>
    %46 = vector.extract_strided_slice %34 {offsets = [0, 64], sizes = [8, 32], strides = [1, 1]} : vector<8x96xf32> to vector<8x32xf32>
    %47 = arith.addf %46, %23 : vector<8x32xf32>
    %48 = arith.mulf %43, %47 : vector<8x32xf32>
    %49 = arith.addf %45, %48 : vector<8x32xf32>
    %50 = math.tanh %49 : vector<8x32xf32>
    %51 = arith.subf %30, %50 : vector<8x32xf32>
    %52 = arith.mulf %44, %51 : vector<8x32xf32>
    %53 = arith.addf %50, %52 : vector<8x32xf32>
    %c8 = arith.constant 8 : index
    %c0_30 = arith.constant 0 : index
    %54 = vector.load %arg13[%c8, %c0_30] : memref<64x96xf32, #tpu.memory_space<vmem>>, vector<8x96xf32>
    %cst_31 = arith.constant dense<0.000000e+00> : vector<8x96xf32>
    %55 = tpu.matmul %53, %7, %cst_31 {dimension_numbers = #tpu.dot_dimension_numbers<[1], [0], [0], [1], [0, 0, 1, 1], [], []>} : vector<8x32xf32>, vector<32x96xf32>, vector<8x96xf32> -> vector<8x96xf32>
    %56 = vector.extract_strided_slice %54 {offsets = [0, 0], sizes = [8, 64], strides = [1, 1]} : vector<8x96xf32> to vector<8x64xf32>
    %57 = vector.extract_strided_slice %55 {offsets = [0, 0], sizes = [8, 64], strides = [1, 1]} : vector<8x96xf32> to vector<8x64xf32>
    %58 = arith.addf %56, %57 : vector<8x64xf32>
    %59 = arith.negf %58 : vector<8x64xf32>
    %60 = math.exp %59 : vector<8x64xf32>
    %cst_32 = arith.constant 1.000000e+00 : f32
    %61 = vector.broadcast %cst_32 : f32 to vector<8x64xf32>
    %62 = arith.addf %61, %60 : vector<8x64xf32>
    %63 = arith.divf %61, %62 : vector<8x64xf32>
    %64 = vector.extract_strided_slice %63 {offsets = [0, 0], sizes = [8, 32], strides = [1, 1]} : vector<8x64xf32> to vector<8x32xf32>
    %65 = vector.extract_strided_slice %63 {offsets = [0, 32], sizes = [8, 32], strides = [1, 1]} : vector<8x64xf32> to vector<8x32xf32>
    %66 = vector.extract_strided_slice %54 {offsets = [0, 64], sizes = [8, 32], strides = [1, 1]} : vector<8x96xf32> to vector<8x32xf32>
    %67 = vector.extract_strided_slice %55 {offsets = [0, 64], sizes = [8, 32], strides = [1, 1]} : vector<8x96xf32> to vector<8x32xf32>
    %68 = arith.addf %67, %23 : vector<8x32xf32>
    %69 = arith.mulf %64, %68 : vector<8x32xf32>
    %70 = arith.addf %66, %69 : vector<8x32xf32>
    %71 = math.tanh %70 : vector<8x32xf32>
    %72 = arith.subf %53, %71 : vector<8x32xf32>
    %73 = arith.mulf %65, %72 : vector<8x32xf32>
    %74 = arith.addf %71, %73 : vector<8x32xf32>
    %cst_33 = arith.constant dense<0.000000e+00> : vector<8x96xf32>
    %75 = tpu.matmul %53, %10, %cst_33 {dimension_numbers = #tpu.dot_dimension_numbers<[1], [0], [0], [1], [0, 0, 1, 1], [], []>} : vector<8x32xf32>, vector<32x96xf32>, vector<8x96xf32> -> vector<8x96xf32>
    %76 = arith.addf %75, %17 : vector<8x96xf32>
    %cst_34 = arith.constant dense<0.000000e+00> : vector<8x96xf32>
    %77 = tpu.matmul %31, %8, %cst_34 {dimension_numbers = #tpu.dot_dimension_numbers<[1], [0], [0], [1], [0, 0, 1, 1], [], []>} : vector<8x32xf32>, vector<32x96xf32>, vector<8x96xf32> -> vector<8x96xf32>
    %78 = vector.extract_strided_slice %76 {offsets = [0, 0], sizes = [8, 64], strides = [1, 1]} : vector<8x96xf32> to vector<8x64xf32>
    %79 = vector.extract_strided_slice %77 {offsets = [0, 0], sizes = [8, 64], strides = [1, 1]} : vector<8x96xf32> to vector<8x64xf32>
    %80 = arith.addf %78, %79 : vector<8x64xf32>
    %81 = arith.negf %80 : vector<8x64xf32>
    %82 = math.exp %81 : vector<8x64xf32>
    %cst_35 = arith.constant 1.000000e+00 : f32
    %83 = vector.broadcast %cst_35 : f32 to vector<8x64xf32>
    %84 = arith.addf %83, %82 : vector<8x64xf32>
    %85 = arith.divf %83, %84 : vector<8x64xf32>
    %86 = vector.extract_strided_slice %85 {offsets = [0, 0], sizes = [8, 32], strides = [1, 1]} : vector<8x64xf32> to vector<8x32xf32>
    %87 = vector.extract_strided_slice %85 {offsets = [0, 32], sizes = [8, 32], strides = [1, 1]} : vector<8x64xf32> to vector<8x32xf32>
    %88 = vector.extract_strided_slice %76 {offsets = [0, 64], sizes = [8, 32], strides = [1, 1]} : vector<8x96xf32> to vector<8x32xf32>
    %89 = vector.extract_strided_slice %77 {offsets = [0, 64], sizes = [8, 32], strides = [1, 1]} : vector<8x96xf32> to vector<8x32xf32>
    %90 = arith.addf %89, %26 : vector<8x32xf32>
    %91 = arith.mulf %86, %90 : vector<8x32xf32>
    %92 = arith.addf %88, %91 : vector<8x32xf32>
    %93 = math.tanh %92 : vector<8x32xf32>
    %94 = arith.subf %31, %93 : vector<8x32xf32>
    %95 = arith.mulf %87, %94 : vector<8x32xf32>
    %96 = arith.addf %93, %95 : vector<8x32xf32>
    %c16 = arith.constant 16 : index
    %c0_36 = arith.constant 0 : index
    %97 = vector.load %arg13[%c16, %c0_36] : memref<64x96xf32, #tpu.memory_space<vmem>>, vector<8x96xf32>
    %cst_37 = arith.constant dense<0.000000e+00> : vector<8x96xf32>
    %98 = tpu.matmul %74, %7, %cst_37 {dimension_numbers = #tpu.dot_dimension_numbers<[1], [0], [0], [1], [0, 0, 1, 1], [], []>} : vector<8x32xf32>, vector<32x96xf32>, vector<8x96xf32> -> vector<8x96xf32>
    %99 = vector.extract_strided_slice %97 {offsets = [0, 0], sizes = [8, 64], strides = [1, 1]} : vector<8x96xf32> to vector<8x64xf32>
    %100 = vector.extract_strided_slice %98 {offsets = [0, 0], sizes = [8, 64], strides = [1, 1]} : vector<8x96xf32> to vector<8x64xf32>
    %101 = arith.addf %99, %100 : vector<8x64xf32>
    %102 = arith.negf %101 : vector<8x64xf32>
    %103 = math.exp %102 : vector<8x64xf32>
    %cst_38 = arith.constant 1.000000e+00 : f32
    %104 = vector.broadcast %cst_38 : f32 to vector<8x64xf32>
    %105 = arith.addf %104, %103 : vector<8x64xf32>
    %106 = arith.divf %104, %105 : vector<8x64xf32>
    %107 = vector.extract_strided_slice %106 {offsets = [0, 0], sizes = [8, 32], strides = [1, 1]} : vector<8x64xf32> to vector<8x32xf32>
    %108 = vector.extract_strided_slice %106 {offsets = [0, 32], sizes = [8, 32], strides = [1, 1]} : vector<8x64xf32> to vector<8x32xf32>
    %109 = vector.extract_strided_slice %97 {offsets = [0, 64], sizes = [8, 32], strides = [1, 1]} : vector<8x96xf32> to vector<8x32xf32>
    %110 = vector.extract_strided_slice %98 {offsets = [0, 64], sizes = [8, 32], strides = [1, 1]} : vector<8x96xf32> to vector<8x32xf32>
    %111 = arith.addf %110, %23 : vector<8x32xf32>
    %112 = arith.mulf %107, %111 : vector<8x32xf32>
    %113 = arith.addf %109, %112 : vector<8x32xf32>
    %114 = math.tanh %113 : vector<8x32xf32>
    %115 = arith.subf %74, %114 : vector<8x32xf32>
    %116 = arith.mulf %108, %115 : vector<8x32xf32>
    %117 = arith.addf %114, %116 : vector<8x32xf32>
    %cst_39 = arith.constant dense<0.000000e+00> : vector<8x96xf32>
    %118 = tpu.matmul %74, %10, %cst_39 {dimension_numbers = #tpu.dot_dimension_numbers<[1], [0], [0], [1], [0, 0, 1, 1], [], []>} : vector<8x32xf32>, vector<32x96xf32>, vector<8x96xf32> -> vector<8x96xf32>
    %119 = arith.addf %118, %17 : vector<8x96xf32>
    %cst_40 = arith.constant dense<0.000000e+00> : vector<8x96xf32>
    %120 = tpu.matmul %96, %8, %cst_40 {dimension_numbers = #tpu.dot_dimension_numbers<[1], [0], [0], [1], [0, 0, 1, 1], [], []>} : vector<8x32xf32>, vector<32x96xf32>, vector<8x96xf32> -> vector<8x96xf32>
    %121 = vector.extract_strided_slice %119 {offsets = [0, 0], sizes = [8, 64], strides = [1, 1]} : vector<8x96xf32> to vector<8x64xf32>
    %122 = vector.extract_strided_slice %120 {offsets = [0, 0], sizes = [8, 64], strides = [1, 1]} : vector<8x96xf32> to vector<8x64xf32>
    %123 = arith.addf %121, %122 : vector<8x64xf32>
    %124 = arith.negf %123 : vector<8x64xf32>
    %125 = math.exp %124 : vector<8x64xf32>
    %cst_41 = arith.constant 1.000000e+00 : f32
    %126 = vector.broadcast %cst_41 : f32 to vector<8x64xf32>
    %127 = arith.addf %126, %125 : vector<8x64xf32>
    %128 = arith.divf %126, %127 : vector<8x64xf32>
    %129 = vector.extract_strided_slice %128 {offsets = [0, 0], sizes = [8, 32], strides = [1, 1]} : vector<8x64xf32> to vector<8x32xf32>
    %130 = vector.extract_strided_slice %128 {offsets = [0, 32], sizes = [8, 32], strides = [1, 1]} : vector<8x64xf32> to vector<8x32xf32>
    %131 = vector.extract_strided_slice %119 {offsets = [0, 64], sizes = [8, 32], strides = [1, 1]} : vector<8x96xf32> to vector<8x32xf32>
    %132 = vector.extract_strided_slice %120 {offsets = [0, 64], sizes = [8, 32], strides = [1, 1]} : vector<8x96xf32> to vector<8x32xf32>
    %133 = arith.addf %132, %26 : vector<8x32xf32>
    %134 = arith.mulf %129, %133 : vector<8x32xf32>
    %135 = arith.addf %131, %134 : vector<8x32xf32>
    %136 = math.tanh %135 : vector<8x32xf32>
    %137 = arith.subf %96, %136 : vector<8x32xf32>
    %138 = arith.mulf %130, %137 : vector<8x32xf32>
    %139 = arith.addf %136, %138 : vector<8x32xf32>
    %cst_42 = arith.constant dense<0.000000e+00> : vector<8x96xf32>
    %140 = tpu.matmul %96, %11, %cst_42 {dimension_numbers = #tpu.dot_dimension_numbers<[1], [0], [0], [1], [0, 0, 1, 1], [], []>} : vector<8x32xf32>, vector<32x96xf32>, vector<8x96xf32> -> vector<8x96xf32>
    %141 = arith.addf %140, %20 : vector<8x96xf32>
    %cst_43 = arith.constant dense<0.000000e+00> : vector<8x96xf32>
    %142 = tpu.matmul %32, %9, %cst_43 {dimension_numbers = #tpu.dot_dimension_numbers<[1], [0], [0], [1], [0, 0, 1, 1], [], []>} : vector<8x32xf32>, vector<32x96xf32>, vector<8x96xf32> -> vector<8x96xf32>
    %143 = vector.extract_strided_slice %141 {offsets = [0, 0], sizes = [8, 64], strides = [1, 1]} : vector<8x96xf32> to vector<8x64xf32>
    %144 = vector.extract_strided_slice %142 {offsets = [0, 0], sizes = [8, 64], strides = [1, 1]} : vector<8x96xf32> to vector<8x64xf32>
    %145 = arith.addf %143, %144 : vector<8x64xf32>
    %146 = arith.negf %145 : vector<8x64xf32>
    %147 = math.exp %146 : vector<8x64xf32>
    %cst_44 = arith.constant 1.000000e+00 : f32
    %148 = vector.broadcast %cst_44 : f32 to vector<8x64xf32>
    %149 = arith.addf %148, %147 : vector<8x64xf32>
    %150 = arith.divf %148, %149 : vector<8x64xf32>
    %151 = vector.extract_strided_slice %150 {offsets = [0, 0], sizes = [8, 32], strides = [1, 1]} : vector<8x64xf32> to vector<8x32xf32>
    %152 = vector.extract_strided_slice %150 {offsets = [0, 32], sizes = [8, 32], strides = [1, 1]} : vector<8x64xf32> to vector<8x32xf32>
    %153 = vector.extract_strided_slice %141 {offsets = [0, 64], sizes = [8, 32], strides = [1, 1]} : vector<8x96xf32> to vector<8x32xf32>
    %154 = vector.extract_strided_slice %142 {offsets = [0, 64], sizes = [8, 32], strides = [1, 1]} : vector<8x96xf32> to vector<8x32xf32>
    %155 = arith.addf %154, %29 : vector<8x32xf32>
    %156 = arith.mulf %151, %155 : vector<8x32xf32>
    %157 = arith.addf %153, %156 : vector<8x32xf32>
    %158 = math.tanh %157 : vector<8x32xf32>
    %159 = arith.subf %32, %158 : vector<8x32xf32>
    %160 = arith.mulf %152, %159 : vector<8x32xf32>
    %161 = arith.addf %158, %160 : vector<8x32xf32>
    %c24 = arith.constant 24 : index
    %c0_45 = arith.constant 0 : index
    %162 = vector.load %arg13[%c24, %c0_45] : memref<64x96xf32, #tpu.memory_space<vmem>>, vector<8x96xf32>
    %cst_46 = arith.constant dense<0.000000e+00> : vector<8x96xf32>
    %163 = tpu.matmul %117, %7, %cst_46 {dimension_numbers = #tpu.dot_dimension_numbers<[1], [0], [0], [1], [0, 0, 1, 1], [], []>} : vector<8x32xf32>, vector<32x96xf32>, vector<8x96xf32> -> vector<8x96xf32>
    %164 = vector.extract_strided_slice %162 {offsets = [0, 0], sizes = [8, 64], strides = [1, 1]} : vector<8x96xf32> to vector<8x64xf32>
    %165 = vector.extract_strided_slice %163 {offsets = [0, 0], sizes = [8, 64], strides = [1, 1]} : vector<8x96xf32> to vector<8x64xf32>
    %166 = arith.addf %164, %165 : vector<8x64xf32>
    %167 = arith.negf %166 : vector<8x64xf32>
    %168 = math.exp %167 : vector<8x64xf32>
    %cst_47 = arith.constant 1.000000e+00 : f32
    %169 = vector.broadcast %cst_47 : f32 to vector<8x64xf32>
    %170 = arith.addf %169, %168 : vector<8x64xf32>
    %171 = arith.divf %169, %170 : vector<8x64xf32>
    %172 = vector.extract_strided_slice %171 {offsets = [0, 0], sizes = [8, 32], strides = [1, 1]} : vector<8x64xf32> to vector<8x32xf32>
    %173 = vector.extract_strided_slice %171 {offsets = [0, 32], sizes = [8, 32], strides = [1, 1]} : vector<8x64xf32> to vector<8x32xf32>
    %174 = vector.extract_strided_slice %162 {offsets = [0, 64], sizes = [8, 32], strides = [1, 1]} : vector<8x96xf32> to vector<8x32xf32>
    %175 = vector.extract_strided_slice %163 {offsets = [0, 64], sizes = [8, 32], strides = [1, 1]} : vector<8x96xf32> to vector<8x32xf32>
    %176 = arith.addf %175, %23 : vector<8x32xf32>
    %177 = arith.mulf %172, %176 : vector<8x32xf32>
    %178 = arith.addf %174, %177 : vector<8x32xf32>
    %179 = math.tanh %178 : vector<8x32xf32>
    %180 = arith.subf %117, %179 : vector<8x32xf32>
    %181 = arith.mulf %173, %180 : vector<8x32xf32>
    %182 = arith.addf %179, %181 : vector<8x32xf32>
    %cst_48 = arith.constant dense<0.000000e+00> : vector<8x96xf32>
    %183 = tpu.matmul %117, %10, %cst_48 {dimension_numbers = #tpu.dot_dimension_numbers<[1], [0], [0], [1], [0, 0, 1, 1], [], []>} : vector<8x32xf32>, vector<32x96xf32>, vector<8x96xf32> -> vector<8x96xf32>
    %184 = arith.addf %183, %17 : vector<8x96xf32>
    %cst_49 = arith.constant dense<0.000000e+00> : vector<8x96xf32>
    %185 = tpu.matmul %139, %8, %cst_49 {dimension_numbers = #tpu.dot_dimension_numbers<[1], [0], [0], [1], [0, 0, 1, 1], [], []>} : vector<8x32xf32>, vector<32x96xf32>, vector<8x96xf32> -> vector<8x96xf32>
    %186 = vector.extract_strided_slice %184 {offsets = [0, 0], sizes = [8, 64], strides = [1, 1]} : vector<8x96xf32> to vector<8x64xf32>
    %187 = vector.extract_strided_slice %185 {offsets = [0, 0], sizes = [8, 64], strides = [1, 1]} : vector<8x96xf32> to vector<8x64xf32>
    %188 = arith.addf %186, %187 : vector<8x64xf32>
    %189 = arith.negf %188 : vector<8x64xf32>
    %190 = math.exp %189 : vector<8x64xf32>
    %cst_50 = arith.constant 1.000000e+00 : f32
    %191 = vector.broadcast %cst_50 : f32 to vector<8x64xf32>
    %192 = arith.addf %191, %190 : vector<8x64xf32>
    %193 = arith.divf %191, %192 : vector<8x64xf32>
    %194 = vector.extract_strided_slice %193 {offsets = [0, 0], sizes = [8, 32], strides = [1, 1]} : vector<8x64xf32> to vector<8x32xf32>
    %195 = vector.extract_strided_slice %193 {offsets = [0, 32], sizes = [8, 32], strides = [1, 1]} : vector<8x64xf32> to vector<8x32xf32>
    %196 = vector.extract_strided_slice %184 {offsets = [0, 64], sizes = [8, 32], strides = [1, 1]} : vector<8x96xf32> to vector<8x32xf32>
    %197 = vector.extract_strided_slice %185 {offsets = [0, 64], sizes = [8, 32], strides = [1, 1]} : vector<8x96xf32> to vector<8x32xf32>
    %198 = arith.addf %197, %26 : vector<8x32xf32>
    %199 = arith.mulf %194, %198 : vector<8x32xf32>
    %200 = arith.addf %196, %199 : vector<8x32xf32>
    %201 = math.tanh %200 : vector<8x32xf32>
    %202 = arith.subf %139, %201 : vector<8x32xf32>
    %203 = arith.mulf %195, %202 : vector<8x32xf32>
    %204 = arith.addf %201, %203 : vector<8x32xf32>
    %cst_51 = arith.constant dense<0.000000e+00> : vector<8x96xf32>
    %205 = tpu.matmul %139, %11, %cst_51 {dimension_numbers = #tpu.dot_dimension_numbers<[1], [0], [0], [1], [0, 0, 1, 1], [], []>} : vector<8x32xf32>, vector<32x96xf32>, vector<8x96xf32> -> vector<8x96xf32>
    %206 = arith.addf %205, %20 : vector<8x96xf32>
    %cst_52 = arith.constant dense<0.000000e+00> : vector<8x96xf32>
    %207 = tpu.matmul %161, %9, %cst_52 {dimension_numbers = #tpu.dot_dimension_numbers<[1], [0], [0], [1], [0, 0, 1, 1], [], []>} : vector<8x32xf32>, vector<32x96xf32>, vector<8x96xf32> -> vector<8x96xf32>
    %208 = vector.extract_strided_slice %206 {offsets = [0, 0], sizes = [8, 64], strides = [1, 1]} : vector<8x96xf32> to vector<8x64xf32>
    %209 = vector.extract_strided_slice %207 {offsets = [0, 0], sizes = [8, 64], strides = [1, 1]} : vector<8x96xf32> to vector<8x64xf32>
    %210 = arith.addf %208, %209 : vector<8x64xf32>
    %211 = arith.negf %210 : vector<8x64xf32>
    %212 = math.exp %211 : vector<8x64xf32>
    %cst_53 = arith.constant 1.000000e+00 : f32
    %213 = vector.broadcast %cst_53 : f32 to vector<8x64xf32>
    %214 = arith.addf %213, %212 : vector<8x64xf32>
    %215 = arith.divf %213, %214 : vector<8x64xf32>
    %216 = vector.extract_strided_slice %215 {offsets = [0, 0], sizes = [8, 32], strides = [1, 1]} : vector<8x64xf32> to vector<8x32xf32>
    %217 = vector.extract_strided_slice %215 {offsets = [0, 32], sizes = [8, 32], strides = [1, 1]} : vector<8x64xf32> to vector<8x32xf32>
    %218 = vector.extract_strided_slice %206 {offsets = [0, 64], sizes = [8, 32], strides = [1, 1]} : vector<8x96xf32> to vector<8x32xf32>
    %219 = vector.extract_strided_slice %207 {offsets = [0, 64], sizes = [8, 32], strides = [1, 1]} : vector<8x96xf32> to vector<8x32xf32>
    %220 = arith.addf %219, %29 : vector<8x32xf32>
    %221 = arith.mulf %216, %220 : vector<8x32xf32>
    %222 = arith.addf %218, %221 : vector<8x32xf32>
    %223 = math.tanh %222 : vector<8x32xf32>
    %224 = arith.subf %161, %223 : vector<8x32xf32>
    %225 = arith.mulf %217, %224 : vector<8x32xf32>
    %226 = arith.addf %223, %225 : vector<8x32xf32>
    %c32 = arith.constant 32 : index
    %c0_54 = arith.constant 0 : index
    %227 = vector.load %arg13[%c32, %c0_54] : memref<64x96xf32, #tpu.memory_space<vmem>>, vector<8x96xf32>
    %cst_55 = arith.constant dense<0.000000e+00> : vector<8x96xf32>
    %228 = tpu.matmul %182, %7, %cst_55 {dimension_numbers = #tpu.dot_dimension_numbers<[1], [0], [0], [1], [0, 0, 1, 1], [], []>} : vector<8x32xf32>, vector<32x96xf32>, vector<8x96xf32> -> vector<8x96xf32>
    %229 = vector.extract_strided_slice %227 {offsets = [0, 0], sizes = [8, 64], strides = [1, 1]} : vector<8x96xf32> to vector<8x64xf32>
    %230 = vector.extract_strided_slice %228 {offsets = [0, 0], sizes = [8, 64], strides = [1, 1]} : vector<8x96xf32> to vector<8x64xf32>
    %231 = arith.addf %229, %230 : vector<8x64xf32>
    %232 = arith.negf %231 : vector<8x64xf32>
    %233 = math.exp %232 : vector<8x64xf32>
    %cst_56 = arith.constant 1.000000e+00 : f32
    %234 = vector.broadcast %cst_56 : f32 to vector<8x64xf32>
    %235 = arith.addf %234, %233 : vector<8x64xf32>
    %236 = arith.divf %234, %235 : vector<8x64xf32>
    %237 = vector.extract_strided_slice %236 {offsets = [0, 0], sizes = [8, 32], strides = [1, 1]} : vector<8x64xf32> to vector<8x32xf32>
    %238 = vector.extract_strided_slice %236 {offsets = [0, 32], sizes = [8, 32], strides = [1, 1]} : vector<8x64xf32> to vector<8x32xf32>
    %239 = vector.extract_strided_slice %227 {offsets = [0, 64], sizes = [8, 32], strides = [1, 1]} : vector<8x96xf32> to vector<8x32xf32>
    %240 = vector.extract_strided_slice %228 {offsets = [0, 64], sizes = [8, 32], strides = [1, 1]} : vector<8x96xf32> to vector<8x32xf32>
    %241 = arith.addf %240, %23 : vector<8x32xf32>
    %242 = arith.mulf %237, %241 : vector<8x32xf32>
    %243 = arith.addf %239, %242 : vector<8x32xf32>
    %244 = math.tanh %243 : vector<8x32xf32>
    %245 = arith.subf %182, %244 : vector<8x32xf32>
    %246 = arith.mulf %238, %245 : vector<8x32xf32>
    %247 = arith.addf %244, %246 : vector<8x32xf32>
    %cst_57 = arith.constant dense<0.000000e+00> : vector<8x96xf32>
    %248 = tpu.matmul %182, %10, %cst_57 {dimension_numbers = #tpu.dot_dimension_numbers<[1], [0], [0], [1], [0, 0, 1, 1], [], []>} : vector<8x32xf32>, vector<32x96xf32>, vector<8x96xf32> -> vector<8x96xf32>
    %249 = arith.addf %248, %17 : vector<8x96xf32>
    %cst_58 = arith.constant dense<0.000000e+00> : vector<8x96xf32>
    %250 = tpu.matmul %204, %8, %cst_58 {dimension_numbers = #tpu.dot_dimension_numbers<[1], [0], [0], [1], [0, 0, 1, 1], [], []>} : vector<8x32xf32>, vector<32x96xf32>, vector<8x96xf32> -> vector<8x96xf32>
    %251 = vector.extract_strided_slice %249 {offsets = [0, 0], sizes = [8, 64], strides = [1, 1]} : vector<8x96xf32> to vector<8x64xf32>
    %252 = vector.extract_strided_slice %250 {offsets = [0, 0], sizes = [8, 64], strides = [1, 1]} : vector<8x96xf32> to vector<8x64xf32>
    %253 = arith.addf %251, %252 : vector<8x64xf32>
    %254 = arith.negf %253 : vector<8x64xf32>
    %255 = math.exp %254 : vector<8x64xf32>
    %cst_59 = arith.constant 1.000000e+00 : f32
    %256 = vector.broadcast %cst_59 : f32 to vector<8x64xf32>
    %257 = arith.addf %256, %255 : vector<8x64xf32>
    %258 = arith.divf %256, %257 : vector<8x64xf32>
    %259 = vector.extract_strided_slice %258 {offsets = [0, 0], sizes = [8, 32], strides = [1, 1]} : vector<8x64xf32> to vector<8x32xf32>
    %260 = vector.extract_strided_slice %258 {offsets = [0, 32], sizes = [8, 32], strides = [1, 1]} : vector<8x64xf32> to vector<8x32xf32>
    %261 = vector.extract_strided_slice %249 {offsets = [0, 64], sizes = [8, 32], strides = [1, 1]} : vector<8x96xf32> to vector<8x32xf32>
    %262 = vector.extract_strided_slice %250 {offsets = [0, 64], sizes = [8, 32], strides = [1, 1]} : vector<8x96xf32> to vector<8x32xf32>
    %263 = arith.addf %262, %26 : vector<8x32xf32>
    %264 = arith.mulf %259, %263 : vector<8x32xf32>
    %265 = arith.addf %261, %264 : vector<8x32xf32>
    %266 = math.tanh %265 : vector<8x32xf32>
    %267 = arith.subf %204, %266 : vector<8x32xf32>
    %268 = arith.mulf %260, %267 : vector<8x32xf32>
    %269 = arith.addf %266, %268 : vector<8x32xf32>
    %cst_60 = arith.constant dense<0.000000e+00> : vector<8x96xf32>
    %270 = tpu.matmul %204, %11, %cst_60 {dimension_numbers = #tpu.dot_dimension_numbers<[1], [0], [0], [1], [0, 0, 1, 1], [], []>} : vector<8x32xf32>, vector<32x96xf32>, vector<8x96xf32> -> vector<8x96xf32>
    %271 = arith.addf %270, %20 : vector<8x96xf32>
    %cst_61 = arith.constant dense<0.000000e+00> : vector<8x96xf32>
    %272 = tpu.matmul %226, %9, %cst_61 {dimension_numbers = #tpu.dot_dimension_numbers<[1], [0], [0], [1], [0, 0, 1, 1], [], []>} : vector<8x32xf32>, vector<32x96xf32>, vector<8x96xf32> -> vector<8x96xf32>
    %273 = vector.extract_strided_slice %271 {offsets = [0, 0], sizes = [8, 64], strides = [1, 1]} : vector<8x96xf32> to vector<8x64xf32>
    %274 = vector.extract_strided_slice %272 {offsets = [0, 0], sizes = [8, 64], strides = [1, 1]} : vector<8x96xf32> to vector<8x64xf32>
    %275 = arith.addf %273, %274 : vector<8x64xf32>
    %276 = arith.negf %275 : vector<8x64xf32>
    %277 = math.exp %276 : vector<8x64xf32>
    %cst_62 = arith.constant 1.000000e+00 : f32
    %278 = vector.broadcast %cst_62 : f32 to vector<8x64xf32>
    %279 = arith.addf %278, %277 : vector<8x64xf32>
    %280 = arith.divf %278, %279 : vector<8x64xf32>
    %281 = vector.extract_strided_slice %280 {offsets = [0, 0], sizes = [8, 32], strides = [1, 1]} : vector<8x64xf32> to vector<8x32xf32>
    %282 = vector.extract_strided_slice %280 {offsets = [0, 32], sizes = [8, 32], strides = [1, 1]} : vector<8x64xf32> to vector<8x32xf32>
    %283 = vector.extract_strided_slice %271 {offsets = [0, 64], sizes = [8, 32], strides = [1, 1]} : vector<8x96xf32> to vector<8x32xf32>
    %284 = vector.extract_strided_slice %272 {offsets = [0, 64], sizes = [8, 32], strides = [1, 1]} : vector<8x96xf32> to vector<8x32xf32>
    %285 = arith.addf %284, %29 : vector<8x32xf32>
    %286 = arith.mulf %281, %285 : vector<8x32xf32>
    %287 = arith.addf %283, %286 : vector<8x32xf32>
    %288 = math.tanh %287 : vector<8x32xf32>
    %289 = arith.subf %226, %288 : vector<8x32xf32>
    %290 = arith.mulf %282, %289 : vector<8x32xf32>
    %291 = arith.addf %288, %290 : vector<8x32xf32>
    %c40 = arith.constant 40 : index
    %c0_63 = arith.constant 0 : index
    %292 = vector.load %arg13[%c40, %c0_63] : memref<64x96xf32, #tpu.memory_space<vmem>>, vector<8x96xf32>
    %cst_64 = arith.constant dense<0.000000e+00> : vector<8x96xf32>
    %293 = tpu.matmul %247, %7, %cst_64 {dimension_numbers = #tpu.dot_dimension_numbers<[1], [0], [0], [1], [0, 0, 1, 1], [], []>} : vector<8x32xf32>, vector<32x96xf32>, vector<8x96xf32> -> vector<8x96xf32>
    %294 = vector.extract_strided_slice %292 {offsets = [0, 0], sizes = [8, 64], strides = [1, 1]} : vector<8x96xf32> to vector<8x64xf32>
    %295 = vector.extract_strided_slice %293 {offsets = [0, 0], sizes = [8, 64], strides = [1, 1]} : vector<8x96xf32> to vector<8x64xf32>
    %296 = arith.addf %294, %295 : vector<8x64xf32>
    %297 = arith.negf %296 : vector<8x64xf32>
    %298 = math.exp %297 : vector<8x64xf32>
    %cst_65 = arith.constant 1.000000e+00 : f32
    %299 = vector.broadcast %cst_65 : f32 to vector<8x64xf32>
    %300 = arith.addf %299, %298 : vector<8x64xf32>
    %301 = arith.divf %299, %300 : vector<8x64xf32>
    %302 = vector.extract_strided_slice %301 {offsets = [0, 0], sizes = [8, 32], strides = [1, 1]} : vector<8x64xf32> to vector<8x32xf32>
    %303 = vector.extract_strided_slice %301 {offsets = [0, 32], sizes = [8, 32], strides = [1, 1]} : vector<8x64xf32> to vector<8x32xf32>
    %304 = vector.extract_strided_slice %292 {offsets = [0, 64], sizes = [8, 32], strides = [1, 1]} : vector<8x96xf32> to vector<8x32xf32>
    %305 = vector.extract_strided_slice %293 {offsets = [0, 64], sizes = [8, 32], strides = [1, 1]} : vector<8x96xf32> to vector<8x32xf32>
    %306 = arith.addf %305, %23 : vector<8x32xf32>
    %307 = arith.mulf %302, %306 : vector<8x32xf32>
    %308 = arith.addf %304, %307 : vector<8x32xf32>
    %309 = math.tanh %308 : vector<8x32xf32>
    %310 = arith.subf %247, %309 : vector<8x32xf32>
    %311 = arith.mulf %303, %310 : vector<8x32xf32>
    %312 = arith.addf %309, %311 : vector<8x32xf32>
    %cst_66 = arith.constant dense<0.000000e+00> : vector<8x96xf32>
    %313 = tpu.matmul %247, %10, %cst_66 {dimension_numbers = #tpu.dot_dimension_numbers<[1], [0], [0], [1], [0, 0, 1, 1], [], []>} : vector<8x32xf32>, vector<32x96xf32>, vector<8x96xf32> -> vector<8x96xf32>
    %314 = arith.addf %313, %17 : vector<8x96xf32>
    %cst_67 = arith.constant dense<0.000000e+00> : vector<8x96xf32>
    %315 = tpu.matmul %269, %8, %cst_67 {dimension_numbers = #tpu.dot_dimension_numbers<[1], [0], [0], [1], [0, 0, 1, 1], [], []>} : vector<8x32xf32>, vector<32x96xf32>, vector<8x96xf32> -> vector<8x96xf32>
    %316 = vector.extract_strided_slice %314 {offsets = [0, 0], sizes = [8, 64], strides = [1, 1]} : vector<8x96xf32> to vector<8x64xf32>
    %317 = vector.extract_strided_slice %315 {offsets = [0, 0], sizes = [8, 64], strides = [1, 1]} : vector<8x96xf32> to vector<8x64xf32>
    %318 = arith.addf %316, %317 : vector<8x64xf32>
    %319 = arith.negf %318 : vector<8x64xf32>
    %320 = math.exp %319 : vector<8x64xf32>
    %cst_68 = arith.constant 1.000000e+00 : f32
    %321 = vector.broadcast %cst_68 : f32 to vector<8x64xf32>
    %322 = arith.addf %321, %320 : vector<8x64xf32>
    %323 = arith.divf %321, %322 : vector<8x64xf32>
    %324 = vector.extract_strided_slice %323 {offsets = [0, 0], sizes = [8, 32], strides = [1, 1]} : vector<8x64xf32> to vector<8x32xf32>
    %325 = vector.extract_strided_slice %323 {offsets = [0, 32], sizes = [8, 32], strides = [1, 1]} : vector<8x64xf32> to vector<8x32xf32>
    %326 = vector.extract_strided_slice %314 {offsets = [0, 64], sizes = [8, 32], strides = [1, 1]} : vector<8x96xf32> to vector<8x32xf32>
    %327 = vector.extract_strided_slice %315 {offsets = [0, 64], sizes = [8, 32], strides = [1, 1]} : vector<8x96xf32> to vector<8x32xf32>
    %328 = arith.addf %327, %26 : vector<8x32xf32>
    %329 = arith.mulf %324, %328 : vector<8x32xf32>
    %330 = arith.addf %326, %329 : vector<8x32xf32>
    %331 = math.tanh %330 : vector<8x32xf32>
    %332 = arith.subf %269, %331 : vector<8x32xf32>
    %333 = arith.mulf %325, %332 : vector<8x32xf32>
    %334 = arith.addf %331, %333 : vector<8x32xf32>
    %cst_69 = arith.constant dense<0.000000e+00> : vector<8x96xf32>
    %335 = tpu.matmul %269, %11, %cst_69 {dimension_numbers = #tpu.dot_dimension_numbers<[1], [0], [0], [1], [0, 0, 1, 1], [], []>} : vector<8x32xf32>, vector<32x96xf32>, vector<8x96xf32> -> vector<8x96xf32>
    %336 = arith.addf %335, %20 : vector<8x96xf32>
    %cst_70 = arith.constant dense<0.000000e+00> : vector<8x96xf32>
    %337 = tpu.matmul %291, %9, %cst_70 {dimension_numbers = #tpu.dot_dimension_numbers<[1], [0], [0], [1], [0, 0, 1, 1], [], []>} : vector<8x32xf32>, vector<32x96xf32>, vector<8x96xf32> -> vector<8x96xf32>
    %338 = vector.extract_strided_slice %336 {offsets = [0, 0], sizes = [8, 64], strides = [1, 1]} : vector<8x96xf32> to vector<8x64xf32>
    %339 = vector.extract_strided_slice %337 {offsets = [0, 0], sizes = [8, 64], strides = [1, 1]} : vector<8x96xf32> to vector<8x64xf32>
    %340 = arith.addf %338, %339 : vector<8x64xf32>
    %341 = arith.negf %340 : vector<8x64xf32>
    %342 = math.exp %341 : vector<8x64xf32>
    %cst_71 = arith.constant 1.000000e+00 : f32
    %343 = vector.broadcast %cst_71 : f32 to vector<8x64xf32>
    %344 = arith.addf %343, %342 : vector<8x64xf32>
    %345 = arith.divf %343, %344 : vector<8x64xf32>
    %346 = vector.extract_strided_slice %345 {offsets = [0, 0], sizes = [8, 32], strides = [1, 1]} : vector<8x64xf32> to vector<8x32xf32>
    %347 = vector.extract_strided_slice %345 {offsets = [0, 32], sizes = [8, 32], strides = [1, 1]} : vector<8x64xf32> to vector<8x32xf32>
    %348 = vector.extract_strided_slice %336 {offsets = [0, 64], sizes = [8, 32], strides = [1, 1]} : vector<8x96xf32> to vector<8x32xf32>
    %349 = vector.extract_strided_slice %337 {offsets = [0, 64], sizes = [8, 32], strides = [1, 1]} : vector<8x96xf32> to vector<8x32xf32>
    %350 = arith.addf %349, %29 : vector<8x32xf32>
    %351 = arith.mulf %346, %350 : vector<8x32xf32>
    %352 = arith.addf %348, %351 : vector<8x32xf32>
    %353 = math.tanh %352 : vector<8x32xf32>
    %354 = arith.subf %291, %353 : vector<8x32xf32>
    %355 = arith.mulf %347, %354 : vector<8x32xf32>
    %356 = arith.addf %353, %355 : vector<8x32xf32>
    %c48 = arith.constant 48 : index
    %c0_72 = arith.constant 0 : index
    %357 = vector.load %arg13[%c48, %c0_72] : memref<64x96xf32, #tpu.memory_space<vmem>>, vector<8x96xf32>
    %cst_73 = arith.constant dense<0.000000e+00> : vector<8x96xf32>
    %358 = tpu.matmul %312, %7, %cst_73 {dimension_numbers = #tpu.dot_dimension_numbers<[1], [0], [0], [1], [0, 0, 1, 1], [], []>} : vector<8x32xf32>, vector<32x96xf32>, vector<8x96xf32> -> vector<8x96xf32>
    %359 = vector.extract_strided_slice %357 {offsets = [0, 0], sizes = [8, 64], strides = [1, 1]} : vector<8x96xf32> to vector<8x64xf32>
    %360 = vector.extract_strided_slice %358 {offsets = [0, 0], sizes = [8, 64], strides = [1, 1]} : vector<8x96xf32> to vector<8x64xf32>
    %361 = arith.addf %359, %360 : vector<8x64xf32>
    %362 = arith.negf %361 : vector<8x64xf32>
    %363 = math.exp %362 : vector<8x64xf32>
    %cst_74 = arith.constant 1.000000e+00 : f32
    %364 = vector.broadcast %cst_74 : f32 to vector<8x64xf32>
    %365 = arith.addf %364, %363 : vector<8x64xf32>
    %366 = arith.divf %364, %365 : vector<8x64xf32>
    %367 = vector.extract_strided_slice %366 {offsets = [0, 0], sizes = [8, 32], strides = [1, 1]} : vector<8x64xf32> to vector<8x32xf32>
    %368 = vector.extract_strided_slice %366 {offsets = [0, 32], sizes = [8, 32], strides = [1, 1]} : vector<8x64xf32> to vector<8x32xf32>
    %369 = vector.extract_strided_slice %357 {offsets = [0, 64], sizes = [8, 32], strides = [1, 1]} : vector<8x96xf32> to vector<8x32xf32>
    %370 = vector.extract_strided_slice %358 {offsets = [0, 64], sizes = [8, 32], strides = [1, 1]} : vector<8x96xf32> to vector<8x32xf32>
    %371 = arith.addf %370, %23 : vector<8x32xf32>
    %372 = arith.mulf %367, %371 : vector<8x32xf32>
    %373 = arith.addf %369, %372 : vector<8x32xf32>
    %374 = math.tanh %373 : vector<8x32xf32>
    %375 = arith.subf %312, %374 : vector<8x32xf32>
    %376 = arith.mulf %368, %375 : vector<8x32xf32>
    %377 = arith.addf %374, %376 : vector<8x32xf32>
    %cst_75 = arith.constant dense<0.000000e+00> : vector<8x96xf32>
    %378 = tpu.matmul %312, %10, %cst_75 {dimension_numbers = #tpu.dot_dimension_numbers<[1], [0], [0], [1], [0, 0, 1, 1], [], []>} : vector<8x32xf32>, vector<32x96xf32>, vector<8x96xf32> -> vector<8x96xf32>
    %379 = arith.addf %378, %17 : vector<8x96xf32>
    %cst_76 = arith.constant dense<0.000000e+00> : vector<8x96xf32>
    %380 = tpu.matmul %334, %8, %cst_76 {dimension_numbers = #tpu.dot_dimension_numbers<[1], [0], [0], [1], [0, 0, 1, 1], [], []>} : vector<8x32xf32>, vector<32x96xf32>, vector<8x96xf32> -> vector<8x96xf32>
    %381 = vector.extract_strided_slice %379 {offsets = [0, 0], sizes = [8, 64], strides = [1, 1]} : vector<8x96xf32> to vector<8x64xf32>
    %382 = vector.extract_strided_slice %380 {offsets = [0, 0], sizes = [8, 64], strides = [1, 1]} : vector<8x96xf32> to vector<8x64xf32>
    %383 = arith.addf %381, %382 : vector<8x64xf32>
    %384 = arith.negf %383 : vector<8x64xf32>
    %385 = math.exp %384 : vector<8x64xf32>
    %cst_77 = arith.constant 1.000000e+00 : f32
    %386 = vector.broadcast %cst_77 : f32 to vector<8x64xf32>
    %387 = arith.addf %386, %385 : vector<8x64xf32>
    %388 = arith.divf %386, %387 : vector<8x64xf32>
    %389 = vector.extract_strided_slice %388 {offsets = [0, 0], sizes = [8, 32], strides = [1, 1]} : vector<8x64xf32> to vector<8x32xf32>
    %390 = vector.extract_strided_slice %388 {offsets = [0, 32], sizes = [8, 32], strides = [1, 1]} : vector<8x64xf32> to vector<8x32xf32>
    %391 = vector.extract_strided_slice %379 {offsets = [0, 64], sizes = [8, 32], strides = [1, 1]} : vector<8x96xf32> to vector<8x32xf32>
    %392 = vector.extract_strided_slice %380 {offsets = [0, 64], sizes = [8, 32], strides = [1, 1]} : vector<8x96xf32> to vector<8x32xf32>
    %393 = arith.addf %392, %26 : vector<8x32xf32>
    %394 = arith.mulf %389, %393 : vector<8x32xf32>
    %395 = arith.addf %391, %394 : vector<8x32xf32>
    %396 = math.tanh %395 : vector<8x32xf32>
    %397 = arith.subf %334, %396 : vector<8x32xf32>
    %398 = arith.mulf %390, %397 : vector<8x32xf32>
    %399 = arith.addf %396, %398 : vector<8x32xf32>
    %cst_78 = arith.constant dense<0.000000e+00> : vector<8x96xf32>
    %400 = tpu.matmul %334, %11, %cst_78 {dimension_numbers = #tpu.dot_dimension_numbers<[1], [0], [0], [1], [0, 0, 1, 1], [], []>} : vector<8x32xf32>, vector<32x96xf32>, vector<8x96xf32> -> vector<8x96xf32>
    %401 = arith.addf %400, %20 : vector<8x96xf32>
    %cst_79 = arith.constant dense<0.000000e+00> : vector<8x96xf32>
    %402 = tpu.matmul %356, %9, %cst_79 {dimension_numbers = #tpu.dot_dimension_numbers<[1], [0], [0], [1], [0, 0, 1, 1], [], []>} : vector<8x32xf32>, vector<32x96xf32>, vector<8x96xf32> -> vector<8x96xf32>
    %403 = vector.extract_strided_slice %401 {offsets = [0, 0], sizes = [8, 64], strides = [1, 1]} : vector<8x96xf32> to vector<8x64xf32>
    %404 = vector.extract_strided_slice %402 {offsets = [0, 0], sizes = [8, 64], strides = [1, 1]} : vector<8x96xf32> to vector<8x64xf32>
    %405 = arith.addf %403, %404 : vector<8x64xf32>
    %406 = arith.negf %405 : vector<8x64xf32>
    %407 = math.exp %406 : vector<8x64xf32>
    %cst_80 = arith.constant 1.000000e+00 : f32
    %408 = vector.broadcast %cst_80 : f32 to vector<8x64xf32>
    %409 = arith.addf %408, %407 : vector<8x64xf32>
    %410 = arith.divf %408, %409 : vector<8x64xf32>
    %411 = vector.extract_strided_slice %410 {offsets = [0, 0], sizes = [8, 32], strides = [1, 1]} : vector<8x64xf32> to vector<8x32xf32>
    %412 = vector.extract_strided_slice %410 {offsets = [0, 32], sizes = [8, 32], strides = [1, 1]} : vector<8x64xf32> to vector<8x32xf32>
    %413 = vector.extract_strided_slice %401 {offsets = [0, 64], sizes = [8, 32], strides = [1, 1]} : vector<8x96xf32> to vector<8x32xf32>
    %414 = vector.extract_strided_slice %402 {offsets = [0, 64], sizes = [8, 32], strides = [1, 1]} : vector<8x96xf32> to vector<8x32xf32>
    %415 = arith.addf %414, %29 : vector<8x32xf32>
    %416 = arith.mulf %411, %415 : vector<8x32xf32>
    %417 = arith.addf %413, %416 : vector<8x32xf32>
    %418 = math.tanh %417 : vector<8x32xf32>
    %419 = arith.subf %356, %418 : vector<8x32xf32>
    %420 = arith.mulf %412, %419 : vector<8x32xf32>
    %421 = arith.addf %418, %420 : vector<8x32xf32>
    %c56 = arith.constant 56 : index
    %c0_81 = arith.constant 0 : index
    %422 = vector.load %arg13[%c56, %c0_81] : memref<64x96xf32, #tpu.memory_space<vmem>>, vector<8x96xf32>
    %cst_82 = arith.constant dense<0.000000e+00> : vector<8x96xf32>
    %423 = tpu.matmul %377, %7, %cst_82 {dimension_numbers = #tpu.dot_dimension_numbers<[1], [0], [0], [1], [0, 0, 1, 1], [], []>} : vector<8x32xf32>, vector<32x96xf32>, vector<8x96xf32> -> vector<8x96xf32>
    %424 = vector.extract_strided_slice %422 {offsets = [0, 0], sizes = [8, 64], strides = [1, 1]} : vector<8x96xf32> to vector<8x64xf32>
    %425 = vector.extract_strided_slice %423 {offsets = [0, 0], sizes = [8, 64], strides = [1, 1]} : vector<8x96xf32> to vector<8x64xf32>
    %426 = arith.addf %424, %425 : vector<8x64xf32>
    %427 = arith.negf %426 : vector<8x64xf32>
    %428 = math.exp %427 : vector<8x64xf32>
    %cst_83 = arith.constant 1.000000e+00 : f32
    %429 = vector.broadcast %cst_83 : f32 to vector<8x64xf32>
    %430 = arith.addf %429, %428 : vector<8x64xf32>
    %431 = arith.divf %429, %430 : vector<8x64xf32>
    %432 = vector.extract_strided_slice %431 {offsets = [0, 0], sizes = [8, 32], strides = [1, 1]} : vector<8x64xf32> to vector<8x32xf32>
    %433 = vector.extract_strided_slice %431 {offsets = [0, 32], sizes = [8, 32], strides = [1, 1]} : vector<8x64xf32> to vector<8x32xf32>
    %434 = vector.extract_strided_slice %422 {offsets = [0, 64], sizes = [8, 32], strides = [1, 1]} : vector<8x96xf32> to vector<8x32xf32>
    %435 = vector.extract_strided_slice %423 {offsets = [0, 64], sizes = [8, 32], strides = [1, 1]} : vector<8x96xf32> to vector<8x32xf32>
    %436 = arith.addf %435, %23 : vector<8x32xf32>
    %437 = arith.mulf %432, %436 : vector<8x32xf32>
    %438 = arith.addf %434, %437 : vector<8x32xf32>
    %439 = math.tanh %438 : vector<8x32xf32>
    %440 = arith.subf %377, %439 : vector<8x32xf32>
    %441 = arith.mulf %433, %440 : vector<8x32xf32>
    %442 = arith.addf %439, %441 : vector<8x32xf32>
    %cst_84 = arith.constant dense<0.000000e+00> : vector<8x96xf32>
    %443 = tpu.matmul %377, %10, %cst_84 {dimension_numbers = #tpu.dot_dimension_numbers<[1], [0], [0], [1], [0, 0, 1, 1], [], []>} : vector<8x32xf32>, vector<32x96xf32>, vector<8x96xf32> -> vector<8x96xf32>
    %444 = arith.addf %443, %17 : vector<8x96xf32>
    %cst_85 = arith.constant dense<0.000000e+00> : vector<8x96xf32>
    %445 = tpu.matmul %399, %8, %cst_85 {dimension_numbers = #tpu.dot_dimension_numbers<[1], [0], [0], [1], [0, 0, 1, 1], [], []>} : vector<8x32xf32>, vector<32x96xf32>, vector<8x96xf32> -> vector<8x96xf32>
    %446 = vector.extract_strided_slice %444 {offsets = [0, 0], sizes = [8, 64], strides = [1, 1]} : vector<8x96xf32> to vector<8x64xf32>
    %447 = vector.extract_strided_slice %445 {offsets = [0, 0], sizes = [8, 64], strides = [1, 1]} : vector<8x96xf32> to vector<8x64xf32>
    %448 = arith.addf %446, %447 : vector<8x64xf32>
    %449 = arith.negf %448 : vector<8x64xf32>
    %450 = math.exp %449 : vector<8x64xf32>
    %cst_86 = arith.constant 1.000000e+00 : f32
    %451 = vector.broadcast %cst_86 : f32 to vector<8x64xf32>
    %452 = arith.addf %451, %450 : vector<8x64xf32>
    %453 = arith.divf %451, %452 : vector<8x64xf32>
    %454 = vector.extract_strided_slice %453 {offsets = [0, 0], sizes = [8, 32], strides = [1, 1]} : vector<8x64xf32> to vector<8x32xf32>
    %455 = vector.extract_strided_slice %453 {offsets = [0, 32], sizes = [8, 32], strides = [1, 1]} : vector<8x64xf32> to vector<8x32xf32>
    %456 = vector.extract_strided_slice %444 {offsets = [0, 64], sizes = [8, 32], strides = [1, 1]} : vector<8x96xf32> to vector<8x32xf32>
    %457 = vector.extract_strided_slice %445 {offsets = [0, 64], sizes = [8, 32], strides = [1, 1]} : vector<8x96xf32> to vector<8x32xf32>
    %458 = arith.addf %457, %26 : vector<8x32xf32>
    %459 = arith.mulf %454, %458 : vector<8x32xf32>
    %460 = arith.addf %456, %459 : vector<8x32xf32>
    %461 = math.tanh %460 : vector<8x32xf32>
    %462 = arith.subf %399, %461 : vector<8x32xf32>
    %463 = arith.mulf %455, %462 : vector<8x32xf32>
    %464 = arith.addf %461, %463 : vector<8x32xf32>
    %cst_87 = arith.constant dense<0.000000e+00> : vector<8x96xf32>
    %465 = tpu.matmul %399, %11, %cst_87 {dimension_numbers = #tpu.dot_dimension_numbers<[1], [0], [0], [1], [0, 0, 1, 1], [], []>} : vector<8x32xf32>, vector<32x96xf32>, vector<8x96xf32> -> vector<8x96xf32>
    %466 = arith.addf %465, %20 : vector<8x96xf32>
    %cst_88 = arith.constant dense<0.000000e+00> : vector<8x96xf32>
    %467 = tpu.matmul %421, %9, %cst_88 {dimension_numbers = #tpu.dot_dimension_numbers<[1], [0], [0], [1], [0, 0, 1, 1], [], []>} : vector<8x32xf32>, vector<32x96xf32>, vector<8x96xf32> -> vector<8x96xf32>
    %468 = vector.extract_strided_slice %466 {offsets = [0, 0], sizes = [8, 64], strides = [1, 1]} : vector<8x96xf32> to vector<8x64xf32>
    %469 = vector.extract_strided_slice %467 {offsets = [0, 0], sizes = [8, 64], strides = [1, 1]} : vector<8x96xf32> to vector<8x64xf32>
    %470 = arith.addf %468, %469 : vector<8x64xf32>
    %471 = arith.negf %470 : vector<8x64xf32>
    %472 = math.exp %471 : vector<8x64xf32>
    %cst_89 = arith.constant 1.000000e+00 : f32
    %473 = vector.broadcast %cst_89 : f32 to vector<8x64xf32>
    %474 = arith.addf %473, %472 : vector<8x64xf32>
    %475 = arith.divf %473, %474 : vector<8x64xf32>
    %476 = vector.extract_strided_slice %475 {offsets = [0, 0], sizes = [8, 32], strides = [1, 1]} : vector<8x64xf32> to vector<8x32xf32>
    %477 = vector.extract_strided_slice %475 {offsets = [0, 32], sizes = [8, 32], strides = [1, 1]} : vector<8x64xf32> to vector<8x32xf32>
    %478 = vector.extract_strided_slice %466 {offsets = [0, 64], sizes = [8, 32], strides = [1, 1]} : vector<8x96xf32> to vector<8x32xf32>
    %479 = vector.extract_strided_slice %467 {offsets = [0, 64], sizes = [8, 32], strides = [1, 1]} : vector<8x96xf32> to vector<8x32xf32>
    %480 = arith.addf %479, %29 : vector<8x32xf32>
    %481 = arith.mulf %476, %480 : vector<8x32xf32>
    %482 = arith.addf %478, %481 : vector<8x32xf32>
    %483 = math.tanh %482 : vector<8x32xf32>
    %484 = arith.subf %421, %483 : vector<8x32xf32>
    %485 = arith.mulf %477, %484 : vector<8x32xf32>
    %486 = arith.addf %483, %485 : vector<8x32xf32>
    %cst_90 = arith.constant dense<0.000000e+00> : vector<8x96xf32>
    %487 = tpu.matmul %442, %10, %cst_90 {dimension_numbers = #tpu.dot_dimension_numbers<[1], [0], [0], [1], [0, 0, 1, 1], [], []>} : vector<8x32xf32>, vector<32x96xf32>, vector<8x96xf32> -> vector<8x96xf32>
    %488 = arith.addf %487, %17 : vector<8x96xf32>
    %cst_91 = arith.constant dense<0.000000e+00> : vector<8x96xf32>
    %489 = tpu.matmul %464, %8, %cst_91 {dimension_numbers = #tpu.dot_dimension_numbers<[1], [0], [0], [1], [0, 0, 1, 1], [], []>} : vector<8x32xf32>, vector<32x96xf32>, vector<8x96xf32> -> vector<8x96xf32>
    %490 = vector.extract_strided_slice %488 {offsets = [0, 0], sizes = [8, 64], strides = [1, 1]} : vector<8x96xf32> to vector<8x64xf32>
    %491 = vector.extract_strided_slice %489 {offsets = [0, 0], sizes = [8, 64], strides = [1, 1]} : vector<8x96xf32> to vector<8x64xf32>
    %492 = arith.addf %490, %491 : vector<8x64xf32>
    %493 = arith.negf %492 : vector<8x64xf32>
    %494 = math.exp %493 : vector<8x64xf32>
    %cst_92 = arith.constant 1.000000e+00 : f32
    %495 = vector.broadcast %cst_92 : f32 to vector<8x64xf32>
    %496 = arith.addf %495, %494 : vector<8x64xf32>
    %497 = arith.divf %495, %496 : vector<8x64xf32>
    %498 = vector.extract_strided_slice %497 {offsets = [0, 0], sizes = [8, 32], strides = [1, 1]} : vector<8x64xf32> to vector<8x32xf32>
    %499 = vector.extract_strided_slice %497 {offsets = [0, 32], sizes = [8, 32], strides = [1, 1]} : vector<8x64xf32> to vector<8x32xf32>
    %500 = vector.extract_strided_slice %488 {offsets = [0, 64], sizes = [8, 32], strides = [1, 1]} : vector<8x96xf32> to vector<8x32xf32>
    %501 = vector.extract_strided_slice %489 {offsets = [0, 64], sizes = [8, 32], strides = [1, 1]} : vector<8x96xf32> to vector<8x32xf32>
    %502 = arith.addf %501, %26 : vector<8x32xf32>
    %503 = arith.mulf %498, %502 : vector<8x32xf32>
    %504 = arith.addf %500, %503 : vector<8x32xf32>
    %505 = math.tanh %504 : vector<8x32xf32>
    %506 = arith.subf %464, %505 : vector<8x32xf32>
    %507 = arith.mulf %499, %506 : vector<8x32xf32>
    %508 = arith.addf %505, %507 : vector<8x32xf32>
    %cst_93 = arith.constant dense<0.000000e+00> : vector<8x96xf32>
    %509 = tpu.matmul %464, %11, %cst_93 {dimension_numbers = #tpu.dot_dimension_numbers<[1], [0], [0], [1], [0, 0, 1, 1], [], []>} : vector<8x32xf32>, vector<32x96xf32>, vector<8x96xf32> -> vector<8x96xf32>
    %510 = arith.addf %509, %20 : vector<8x96xf32>
    %cst_94 = arith.constant dense<0.000000e+00> : vector<8x96xf32>
    %511 = tpu.matmul %486, %9, %cst_94 {dimension_numbers = #tpu.dot_dimension_numbers<[1], [0], [0], [1], [0, 0, 1, 1], [], []>} : vector<8x32xf32>, vector<32x96xf32>, vector<8x96xf32> -> vector<8x96xf32>
    %512 = vector.extract_strided_slice %510 {offsets = [0, 0], sizes = [8, 64], strides = [1, 1]} : vector<8x96xf32> to vector<8x64xf32>
    %513 = vector.extract_strided_slice %511 {offsets = [0, 0], sizes = [8, 64], strides = [1, 1]} : vector<8x96xf32> to vector<8x64xf32>
    %514 = arith.addf %512, %513 : vector<8x64xf32>
    %515 = arith.negf %514 : vector<8x64xf32>
    %516 = math.exp %515 : vector<8x64xf32>
    %cst_95 = arith.constant 1.000000e+00 : f32
    %517 = vector.broadcast %cst_95 : f32 to vector<8x64xf32>
    %518 = arith.addf %517, %516 : vector<8x64xf32>
    %519 = arith.divf %517, %518 : vector<8x64xf32>
    %520 = vector.extract_strided_slice %519 {offsets = [0, 0], sizes = [8, 32], strides = [1, 1]} : vector<8x64xf32> to vector<8x32xf32>
    %521 = vector.extract_strided_slice %519 {offsets = [0, 32], sizes = [8, 32], strides = [1, 1]} : vector<8x64xf32> to vector<8x32xf32>
    %522 = vector.extract_strided_slice %510 {offsets = [0, 64], sizes = [8, 32], strides = [1, 1]} : vector<8x96xf32> to vector<8x32xf32>
    %523 = vector.extract_strided_slice %511 {offsets = [0, 64], sizes = [8, 32], strides = [1, 1]} : vector<8x96xf32> to vector<8x32xf32>
    %524 = arith.addf %523, %29 : vector<8x32xf32>
    %525 = arith.mulf %520, %524 : vector<8x32xf32>
    %526 = arith.addf %522, %525 : vector<8x32xf32>
    %527 = math.tanh %526 : vector<8x32xf32>
    %528 = arith.subf %486, %527 : vector<8x32xf32>
    %529 = arith.mulf %521, %528 : vector<8x32xf32>
    %530 = arith.addf %527, %529 : vector<8x32xf32>
    %cst_96 = arith.constant dense<0.000000e+00> : vector<8x96xf32>
    %531 = tpu.matmul %508, %11, %cst_96 {dimension_numbers = #tpu.dot_dimension_numbers<[1], [0], [0], [1], [0, 0, 1, 1], [], []>} : vector<8x32xf32>, vector<32x96xf32>, vector<8x96xf32> -> vector<8x96xf32>
    %532 = arith.addf %531, %20 : vector<8x96xf32>
    %cst_97 = arith.constant dense<0.000000e+00> : vector<8x96xf32>
    %533 = tpu.matmul %530, %9, %cst_97 {dimension_numbers = #tpu.dot_dimension_numbers<[1], [0], [0], [1], [0, 0, 1, 1], [], []>} : vector<8x32xf32>, vector<32x96xf32>, vector<8x96xf32> -> vector<8x96xf32>
    %534 = vector.extract_strided_slice %532 {offsets = [0, 0], sizes = [8, 64], strides = [1, 1]} : vector<8x96xf32> to vector<8x64xf32>
    %535 = vector.extract_strided_slice %533 {offsets = [0, 0], sizes = [8, 64], strides = [1, 1]} : vector<8x96xf32> to vector<8x64xf32>
    %536 = arith.addf %534, %535 : vector<8x64xf32>
    %537 = arith.negf %536 : vector<8x64xf32>
    %538 = math.exp %537 : vector<8x64xf32>
    %cst_98 = arith.constant 1.000000e+00 : f32
    %539 = vector.broadcast %cst_98 : f32 to vector<8x64xf32>
    %540 = arith.addf %539, %538 : vector<8x64xf32>
    %541 = arith.divf %539, %540 : vector<8x64xf32>
    %542 = vector.extract_strided_slice %541 {offsets = [0, 0], sizes = [8, 32], strides = [1, 1]} : vector<8x64xf32> to vector<8x32xf32>
    %543 = vector.extract_strided_slice %541 {offsets = [0, 32], sizes = [8, 32], strides = [1, 1]} : vector<8x64xf32> to vector<8x32xf32>
    %544 = vector.extract_strided_slice %532 {offsets = [0, 64], sizes = [8, 32], strides = [1, 1]} : vector<8x96xf32> to vector<8x32xf32>
    %545 = vector.extract_strided_slice %533 {offsets = [0, 64], sizes = [8, 32], strides = [1, 1]} : vector<8x96xf32> to vector<8x32xf32>
    %546 = arith.addf %545, %29 : vector<8x32xf32>
    %547 = arith.mulf %542, %546 : vector<8x32xf32>
    %548 = arith.addf %544, %547 : vector<8x32xf32>
    %549 = math.tanh %548 : vector<8x32xf32>
    %550 = arith.subf %530, %549 : vector<8x32xf32>
    %551 = arith.mulf %543, %550 : vector<8x32xf32>
    %552 = arith.addf %549, %551 : vector<8x32xf32>
    %c0_99 = arith.constant 0 : index
    %c0_100 = arith.constant 0 : index
    %553 = vector.load %arg10[%c0_99, %c0_100] : memref<32x1xf32, #tpu.memory_space<vmem>>, vector<32x1xf32>
    %cst_101 = arith.constant dense<0.000000e+00> : vector<8x1xf32>
    %554 = tpu.matmul %552, %553, %cst_101 {dimension_numbers = #tpu.dot_dimension_numbers<[1], [0], [0], [1], [0, 0, 1, 1], [], []>} : vector<8x32xf32>, vector<32x1xf32>, vector<8x1xf32> -> vector<8x1xf32>
    %c0_102 = arith.constant 0 : index
    %c0_103 = arith.constant 0 : index
    %555 = vector.load %arg11[%c0_102, %c0_103] : memref<1x1xf32, #tpu.memory_space<vmem>>, vector<1x1xf32>
    %556 = vector.broadcast %555 : vector<1x1xf32> to vector<8x1xf32>
    %557 = arith.addf %554, %556 : vector<8x1xf32>
    %c0_104 = arith.constant 0 : index
    %c0_105 = arith.constant 0 : index
    %558 = vector.load %arg12[%c0_104, %c0_105] : memref<8x1xf32, #tpu.memory_space<vmem>>, vector<8x1xf32>
    tpu.vector_store %arg12[%c0_104, %c0_105], %557 {strides = array<i32>} : memref<8x1xf32, #tpu.memory_space<vmem>>, vector<8x1xf32>,
    return
  }
}

</mosaic_0001>

<bundles_post_ra>
// kernel: tpu_custom_call.1
= control target key start
LH: loop header
LB: loop body
LE: loop exit
PB: predicated region body
PF: predicated region fallthrough
CT: control target
= control target key end

     0   :  { %s6025_s0 = inlined_call_operand.vmem [shape: f32[64,4], index: 0, kind: input, shape index: {}]   ;;  %s6026_s1 = inlined_call_operand.hbm [shape: f32[4,96], index: 1, kind: input, shape index: {}]   ;;  %s6027_s2 = inlined_call_operand.vmem [shape: f32[32,96], index: 2, kind: input, shape index: {}]   ;;  %s6028_s3 = inlined_call_operand.vmem [shape: f32[1,128], index: 3, kind: input, shape index: {}]   ;;  %s6029_s4 = inlined_call_operand.vmem [shape: f32[32,96], index: 4, kind: input, shape index: {}]   ;;  %s6030_s5 = inlined_call_operand.vmem [shape: f32[32,96], index: 5, kind: input, shape index: {}]   ;;  %s6031_s6 = inlined_call_operand.vmem [shape: f32[1,128], index: 6, kind: input, shape index: {}]   ;;  %s6032_s7 = inlined_call_operand.vmem [shape: f32[32,96], index: 7, kind: input, shape index: {}]   ;;  %s6033_s8 = inlined_call_operand.hbm [shape: f32[32,96], index: 8, kind: input, shape index: {}]   ;;  %s6034_s9 = inlined_call_operand.vmem [shape: f32[1,128], index: 9, kind: input, shape index: {}]   ;;  %s6035_s10 = inlined_call_operand.vmem [shape: f32[32,1], index: 10, kind: input, shape index: {}]   ;;  %s6036_s11 = inlined_call_operand.<no memory space> [shape: f32[1,1], index: 11, kind: input, shape index: {}]   ;;  %s6037_s12 = inlined_call_operand.vmem [shape: f32[8,1], index: 12, kind: output, shape index: {}]  }
   0x1   :  { %v17_v0 = vstv %s6036_s11 }
   0x2   :  { %18 = vst [vmem:[#allocation3] sm:$0x1] %v17_v0 }
   0x3   :  { %19 = vsyncpa [#allocation5], 0 }
   0x4   :  { %20 = vsyncpa [#allocation7], 0  ;;  %s5223_s23 = smov [#allocation4]   ;;  %s5224_s25 = smov [#allocation6]  }
   0x5   :  { %s29_s24 = sshll.u32 %s5223_s23, 4  ;;  %s50_s26 = sshll.u32 %s5224_s25, 4  ;;  %s30_s24 = int_to_ptr.vmem [resolvable:$true] %s29_s24  ;;  %s5301_s26 = int_to_ptr.vmem [resolvable:$true] %s50_s26 }
   0x6   :  { %s5175_s29 = scalar_lea.hbm %s6026_s1, 64 }
   0x7   :  { %p5176_p0 = scmp.ne.s32.totalorder %s6026_s1, %s5175_s29  ;;  %p5179_p1 = scmp.lt.u32.totalorder %s5175_s29, %s6026_s1 }
   0x9   :  { %p5181_p2 = pnand %p5179_p1, %p5176_p0 }
   0xb   :  { %5184 = shalt.err (!%p5181_p2)
}
   0xc   :  { %s5185_s15 = scalar_lea.vmem %s30_s24, 64  ;;  %p5190_p4 = scmp.lt.s32.totalorder %s30_s24, %s30_s24 }
   0xd   :  { %p5186_p3 = scmp.ne.s32.totalorder %s30_s24, %s5185_s15  ;;  %p5191_p5 = scmp.lt.s32.totalorder %s5185_s15, %s5185_s15 }
   0xf   :  { %p5192_p6 = por %p5191_p5, %p5190_p4 }
  0x11   :  { %p5193_p7 = pnand %p5192_p6, %p5186_p3 }
  0x13   :  { %5196 = shalt.err (!%p5193_p7)
}
  0x14   :  { %32 = dma.hbm_to_vmem [thread:$0]  %s6026_s1, 64, %s30_s24, [#allocation5]  }
  0x15   :  { %s5197_s20 = scalar_lea.hbm %s6033_s8, 512 }
  0x16   :  { %p5198_p8 = scmp.ne.s32.totalorder %s6033_s8, %s5197_s20  ;;  %p5201_p9 = scmp.lt.u32.totalorder %s5197_s20, %s6033_s8 }
  0x18   :  { %p5203_p10 = pnand %p5201_p9, %p5198_p8 }
  0x1a   :  { %5206 = shalt.err (!%p5203_p10)
}
  0x1b   :  { %s5207_s27 = scalar_lea.vmem %s5301_s26, 512  ;;  %p5212_p12 = scmp.lt.s32.totalorder %s5301_s26, %s5301_s26 }
  0x1c   :  { %p5208_p11 = scmp.ne.s32.totalorder %s5301_s26, %s5207_s27  ;;  %p5213_p13 = scmp.lt.s32.totalorder %s5207_s27, %s5207_s27 }
  0x1e   :  { %p5214_p0 = por %p5213_p13, %p5212_p12 }
  0x20   :  { %p5215_p1 = pnand %p5214_p0, %p5208_p11 }
  0x22   :  { %5218 = shalt.err (!%p5215_p1)
}
  0x23   :  { %s5225_s1 = smov 128   ;;  %s5226_s24 = smov 8  }
  0x24   :  { %56 = dma.hbm_to_vmem [thread:$0]  %s6033_s8, 512, %s5301_s26, [#allocation7], %s5225_s1, %s5225_s1, %s5226_s24  }
  0x25   :  { %5219 = dma.done.wait [#allocation5], 64  }
  0x26   :  { %5220 = vsyncadd [#allocation5], 4294967232 }
  0x27   :  { %5221 = dma.done.wait [#allocation7], 512  }
  0x28   :  { %5222 = vsyncadd [#allocation7], 4294966784  ;;  %v5227_v1 = vmov 0.0|0.0   ;;  %vm5228_vm0 = vmmov 0   ;;  %v5229_v2 = vmov 0.0   ;;  %vm110_vm1 = vcmask 1043456  }
  0x29   :  { %4773 = vmatprep.subr.bf16.mxu1 %v5227_v1  ;;  %4330 = vmatprep.mubr.msk.f32.mxu1 %vm5228_vm0, %v5229_v2  ;;  %vm85_vm2 = vcmask 31744   ;;  %v77_v3 = vld [vmem:[#allocation4] sm:$0xf]  ;;  %v70_v5 = vld [vmem:[%s6025_s0 + $0x8] sm:$0xff]  ;;  %v230_v8 = vld [vmem:[%s6027_s2 + $0x10] sm:$0xff]  ;;  %s5230_s23 = smov 96  }
  0x2a   :  { %v69_v4 = vld [vmem:[%s6025_s0] sm:$0xff]  ;;  %4308 = vmatprep.subr.msk.mxu0 %vm110_vm1, %v77_v3  ;;  %v229_v7 = vld [vmem:[%s6027_s2 + $0x8] sm:$0xff]  ;;  %v231_v10 = vld [vmem:[%s6027_s2 + $0x18] sm:$0xff]  ;;  %vm219_vm3 = vcmask 785408   ;;  %vm269_vm4 = vcmask 261120   ;;  %vm4010_vm5 = vcmask 7168  }
  0x2b   :  { %4310 = vmatprep.mubr.msk.f32.mxu0 %vm85_vm2, %v69_v4  ;;  %v228_v6 = vld [vmem:[%s6027_s2] sm:$0xff]  ;;  %4309 = vmatpush3.msk.msra.mxu0 %vm110_vm1, %v77_v3  ;;  %v5365_v12 = vpack.c.bf16 %v231_v10, %v230_v8  ;;  %s5231_s2 = smov 64   ;;  %v71_v33 = vld [vmem:[%s6025_s0 + $0x10] sm:$0xff]  ;;  %v72_v34 = vld [vmem:[%s6025_s0 + $0x18] sm:$0xff] }
  0x2c   :  { %v5351_v9 = vpack.c.bf16 %v229_v7, %v228_v6  ;;  %v5359_v11 = vld [vmem:[%s6028_s3] ss:$0 sm:$0xff]  ;;  %4311 = vmatmul.mubr.msk.f32.vlgmr.msra.gmra.mrb[0].mxu0 %vm85_vm2, %v70_v5  ;;  %4785 = vmatprep.subr.bf16.mxu0 %v5227_v1  ;;  %v241_v37 = vld [vmem:[%s6029_s4 + $0x8] sm:$0xff]  ;;  %v242_v39 = vld [vmem:[%s6029_s4 + $0x10] sm:$0xff] }
  0x2d   :  { %350 = vrot.lane.b32.xlu0 %v5359_v11, %s5230_s23  ;;  %v73_v35 = vld [vmem:[%s6025_s0 + $0x20] sm:$0xff]  ;;  %4313 = vmatprep.mubr.msk.f32.mxu0 %vm85_vm2, %v71_v33  ;;  %v74_v40 = vld [vmem:[%s6025_s0 + $0x28] sm:$0xff]  ;;  %v243_v41 = vld [vmem:[%s6029_s4 + $0x18] sm:$0xff] }
  0x2e   :  { %4775 = vmatpush3.bf16.msra.mxu1 %v5351_v9  ;;  %v240_v36 = vld [vmem:[%s6029_s4] sm:$0xff]  ;;  %v75_v42 = vld [vmem:[%s6025_s0 + $0x30] sm:$0xff]  ;;  %v5421_v43 = vpack.c.bf16 %v243_v41, %v242_v39  ;;  %v76_v44 = vld [vmem:[%s6025_s0 + $0x38] sm:$0xff]  ;;  %s5232_s4 = smov 32  }
  0x2f   :  { %4776 = vmatprep.subr.bf16.mxu1 %v5227_v1  ;;  %v5405_v38 = vpack.c.bf16 %v241_v37, %v240_v36  ;;  %v5438_v47 = vld [vmem:[%s6031_s6] ss:$0 sm:$0xff]  ;;  %v233_v63 = vld [vmem:[%s6030_s5 + $0x8] sm:$0xff]  ;;  %v234_v3 = vld [vmem:[%s6030_s5 + $0x10] sm:$0xff] }
  0x30   :  { %4314 = vmatmul.mubr.msk.f32.gmra.mrb[2].mxu0 %vm85_vm2, %v72_v34  ;;  %v232_v62 = vld [vmem:[%s6030_s5] sm:$0xff]  ;;  %v235_v4 = vld [vmem:[%s6030_s5 + $0x18] sm:$0xff] }
  0x31   :  { %4316 = vmatprep.mubr.msk.f32.mxu0 %vm85_vm2, %v73_v35  ;;  %4787 = vmatpush3.bf16.msra.mxu0 %v5405_v38  ;;  %v5464_v0 = vpack.c.bf16 %v233_v63, %v232_v62  ;;  %v5475_v6 = vpack.c.bf16 %v235_v4, %v234_v3  ;;  %v236_v62 = vld [vmem:[#allocation6] sm:$0xff]  ;;  %v237_v63 = vld [vmem:[#allocation6 + $0x8] sm:$0xff]  ;;  %v238_v4 = vld [vmem:[#allocation6 + $0x10] sm:$0xff] }
  0x32   :  { %4778 = vmatpush3.bf16.msra.mxu1 %v5365_v12  ;;  %4788 = vmatprep.subr.bf16.mxu0 %v5227_v1  ;;  %v5552_v3 = vpack.c.bf16 %v237_v63, %v236_v62 }
  0x33   :  { %4779 = vmatprep.subr.bf16.mxu1 %v5227_v1 }
  0x34   :  { %4317 = vmatmul.mubr.msk.f32.gmra.mrb[4].mxu0 %vm85_vm2, %v74_v40 }
  0x35   :  { %4331 = vmatmul.mubr.f32.vlgmr.msra.gmra.mrb[0].mxu1 %v5229_v2  ;;  %4319 = vmatprep.mubr.msk.f32.mxu0 %vm85_vm2, %v75_v42 }
  0x36   :  { %4781 = vmatpush3.bf16.msra.mxu1 %v5351_v9  ;;  %4341 = vmatprep.mubr.msk.f32.mxu1 %vm5228_vm0, %v5229_v2 }
  0x37   :  { %4782 = vmatprep.subr.bf16.mxu1 %v5227_v1  ;;  %4790 = vmatpush3.bf16.msra.mxu0 %v5421_v43 }
  0x38   :  { %4797 = vmatprep.subr.bf16.mxu0 %v5227_v1  ;;  %4320 = vmatmul.mubr.msk.f32.gmra.mrb[6].mxu0 %vm85_vm2, %v76_v44 }
  0x39   :  { %4352 = vmatprep.mubr.msk.f32.mxu0 %vm5228_vm0, %v5229_v2 }
  0x3a   :  { %4784 = vmatpush3.bf16.msra.mxu1 %v5365_v12 }
  0x3b   :  { %4791 = vmatprep.subr.bf16.mxu1 %v5227_v1 }
  0x9f   :  { %v5382_v17 = vpop.permute.xlu0 %350 }
  0xff   :  { %v4312_v13 = vpop.f32.mrb[0].mxu0 }
 0x100   :  { %v186_v14 = vadd.f32 %v4312_v13, %v5359_v11  ;;  %v180_v15 = vpop.f32.mrb[1].mxu0 }
 0x101   :  { %v181_v16 = vadd.f32 %v5359_v11, %v180_v15 }
 0x102   :  { %221 = vst.msk [vmem:[#allocation2 + $0x8] sm:$0xff] %vm219_vm3, %v186_v14 }
 0x103   :  { %220 = vst.msk [vmem:[#allocation2] sm:$0xff] %vm219_vm3, %v181_v16  ;;  %v4315_v50 = vpop.f32.mrb[2].mxu0 }
 0x104   :  { %v196_v51 = vadd.f32 %v4315_v50, %v5359_v11  ;;  %v190_v52 = vpop.f32.mrb[3].mxu0 }
 0x105   :  { %v191_v53 = vadd.f32 %v5359_v11, %v190_v52 }
 0x106   :  { %223 = vst.msk [vmem:[#allocation2 + $0x18] sm:$0xff] %vm219_vm3, %v196_v51 }
 0x107   :  { %222 = vst.msk [vmem:[#allocation2 + $0x10] sm:$0xff] %vm219_vm3, %v191_v53  ;;  %v4318_v54 = vpop.f32.mrb[4].mxu0 }
 0x108   :  { %v339_v18 = vpop.f32.mrb[0].mxu1  ;;  %v206_v55 = vadd.f32 %v4318_v54, %v5359_v11  ;;  %v200_v56 = vpop.f32.mrb[5].mxu0 }
 0x109   :  { %v353_v19 = vadd.f32 %v5382_v17, %v339_v18  ;;  %v4332_v20 = vpop.f32.mrb[1].mxu1  ;;  %v201_v57 = vadd.f32 %v5359_v11, %v200_v56  ;;  %v245_v56 = vld [vmem:[%s6032_s7 + $0x8] sm:$0xff] }
 0x10a   :  { %v268_v21 = vld [vmem:[#allocation2] sm:$0xff]  ;;  %225 = vst.msk [vmem:[#allocation2 + $0x28] sm:$0xff] %vm219_vm3, %v206_v55 }
 0x10b   :  { %355 = vrot.lane.b32.xlu0 %v353_v19, %s5231_s2  ;;  %v343_v22 = vadd.f32 %v339_v18, %v268_v21  ;;  %224 = vst.msk [vmem:[#allocation2 + $0x20] sm:$0xff] %vm219_vm3, %v201_v57  ;;  %v4321_v58 = vpop.f32.mrb[6].mxu0  ;;  %v376_v19 = vld [vmem:[#allocation2 + $0x8] sm:$0xff]  ;;  %v244_v55 = vld [vmem:[%s6032_s7] sm:$0xff] }
 0x10c   :  { %v216_v59 = vadd.f32 %v4321_v58, %v5359_v11  ;;  %v210_v60 = vpop.f32.mrb[7].mxu0  ;;  %v5530_v57 = vpack.c.bf16 %v245_v56, %v244_v55  ;;  %v246_v58 = vld [vmem:[%s6032_s7 + $0x10] sm:$0xff] }
 0x10d   :  { %v4031_v23 = vmul.f32 -1.442695, %v343_v22  ;;  %v211_v61 = vadd.f32 %v5359_v11, %v210_v60 }
 0x10e   :  { %227 = vst.msk [vmem:[#allocation2 + $0x38] sm:$0xff] %vm219_vm3, %v216_v59  ;;  %v247_v59 = vld [vmem:[%s6032_s7 + $0x18] sm:$0xff] }
 0x10f   :  { %5029 = vpow2.f32 %v4031_v23  ;;  %226 = vst.msk [vmem:[#allocation2 + $0x30] sm:$0xff] %vm219_vm3, %v211_v61  ;;  %v5542_v61 = vpack.c.bf16 %v247_v59, %v246_v58 }
 0x119   :  { %v5030_v24 = vpop.eup %5029 }
 0x11a   :  { %v347_v25 = vadd.f32 1.0, %v5030_v24 }
 0x11c   :  { %5031 = vrcp.f32 %v347_v25 }
 0x126   :  { %v5032_v26 = vpop.eup %5031 }
 0x17d   :  { %v356_v27 = vpop.permute.xlu0 %355 }
 0x17e   :  { %v358_v28 = vmul.f32 %v5032_v26, %v356_v27 }
 0x180   :  { %360 = vrot.lane.b32.xlu1 %v358_v28, %s5231_s2 }
 0x1f2   :  { %v361_v29 = vpop.permute.xlu1 %360 }
 0x1f3   :  { %v363_v30 = vadd.f32 %v361_v29, %v268_v21 }
 0x1f5   :  { %5033 = vtanh.f32 %v363_v30 }
 0x1ff   :  { %v5034_v31 = vpop.eup %5033 }
 0x200   :  { %v365_v32 = vsub.f32 0.0, %v5034_v31 }
 0x202   :  { %367 = vrot.lane.b32.xlu1 %v365_v32, %s5230_s23 }
 0x274   :  { %v368_v45 = vpop.permute.xlu1 %367 }
 0x275   :  { %v370_v46 = vmul.f32 %v5032_v26, %v368_v45 }
 0x277   :  { %372 = vrot.lane.b32.xlu0 %v370_v46, %s5232_s4 }
 0x27b   :  { %629 = vrot.lane.b32.xlu0 %v5438_v47, %s5230_s23 }
 0x2e9   :  { %v373_v48 = vpop.permute.xlu0 %372 }
 0x2ea   :  { %v5442_v49 = vadd.f32 %v5034_v31, %v373_v48 }
 0x2ec   :  { %378 = vrot.lane.b32.xlu1 %v5442_v49, %s5231_s2 }
 0x2ed   :  { %v5497_v14 = vpop.permute.xlu0 %629 }
 0x35e   :  { %v379_v5 = vpop.permute.xlu1 %378 }
 0x35f   :  { %4342 = vmatmul.mubr.msk.f32.vlgmr.msra.gmra.mrb[2].mxu1 %vm269_vm4, %v379_v5  ;;  %4353 = vmatmul.mubr.msk.f32.vlgmr.msra.gmra.mrb[8].mxu0 %vm269_vm4, %v379_v5  ;;  %v239_v5 = vld [vmem:[#allocation6 + $0x18] sm:$0xff] }
 0x360   :  { %4793 = vmatpush3.bf16.msra.mxu1 %v5464_v0  ;;  %4363 = vmatprep.mubr.msk.f32.mxu1 %vm5228_vm0, %v5229_v2 }
 0x361   :  { %4794 = vmatprep.subr.bf16.mxu1 %v5227_v1  ;;  %4799 = vmatpush3.bf16.msra.mxu0 %v5351_v9 }
 0x362   :  { %4800 = vmatprep.subr.bf16.mxu0 %v5227_v1  ;;  %4374 = vmatprep.mubr.msk.f32.mxu0 %vm5228_vm0, %v5229_v2 }
 0x364   :  { %4796 = vmatpush3.bf16.msra.mxu1 %v5475_v6 }
 0x365   :  { %4803 = vmatprep.subr.bf16.mxu1 %v5227_v1  ;;  %4802 = vmatpush3.bf16.msra.mxu0 %v5365_v12 }
 0x366   :  { %4809 = vmatprep.subr.bf16.mxu0 %v5227_v1 }
 0x367   :  { %4364 = vmatmul.mubr.f32.vlgmr.msra.gmra.mrb[4].mxu1 %v5229_v2 }
 0x368   :  { %4805 = vmatpush3.bf16.msra.mxu1 %v5405_v38  ;;  %4385 = vmatprep.mubr.msk.f32.mxu1 %vm5228_vm0, %v5229_v2 }
 0x369   :  { %4806 = vmatprep.subr.bf16.mxu1 %v5227_v1 }
 0x36c   :  { %4808 = vmatpush3.bf16.msra.mxu1 %v5421_v43 }
 0x36d   :  { %4815 = vmatprep.subr.bf16.mxu1 %v5227_v1 }
 0x432   :  { %v448_v7 = vpop.f32.mrb[2].mxu1  ;;  %v548_v8 = vpop.f32.mrb[8].mxu0 }
 0x433   :  { %v459_v10 = vadd.f32 %v448_v7, %v5382_v17  ;;  %v4343_v11 = vpop.f32.mrb[3].mxu1  ;;  %v4354_v13 = vpop.f32.mrb[9].mxu0  ;;  %v452_v20 = vadd.f32 %v448_v7, %v376_v19  ;;  %v549_v22 = vadd.f32 %v5438_v47, %v548_v8  ;;  %v5559_v8 = vpack.c.bf16 %v239_v5, %v238_v4 }
 0x435   :  { %461 = vrot.lane.b32.xlu1 %v459_v10, %s5231_s2  ;;  %v4033_v21 = vmul.f32 -1.442695, %v452_v20 }
 0x437   :  { %5035 = vpow2.f32 %v4033_v21 }
 0x43a   :  { %v618_v15 = vpop.f32.mrb[4].mxu1 }
 0x43b   :  { %v4365_v16 = vpop.f32.mrb[5].mxu1  ;;  %v632_v18 = vadd.f32 %v5497_v14, %v618_v15  ;;  %v622_v23 = vadd.f32 %v618_v15, %v549_v22 }
 0x43d   :  { %634 = vrot.lane.b32.xlu0 %v632_v18, %s5231_s2  ;;  %v4035_v24 = vmul.f32 -1.442695, %v622_v23 }
 0x43f   :  { %5037 = vpow2.f32 %v4035_v24 }
 0x441   :  { %v5036_v25 = vpop.eup %5035 }
 0x442   :  { %v456_v26 = vadd.f32 1.0, %v5036_v25 }
 0x444   :  { %5039 = vrcp.f32 %v456_v26 }
 0x449   :  { %v5038_v27 = vpop.eup %5037 }
 0x44a   :  { %v626_v28 = vadd.f32 1.0, %v5038_v27  ;;  %v655_v27 = vld [vmem:[#allocation2 + $0x10] sm:$0xff] }
 0x44c   :  { %5041 = vrcp.f32 %v626_v28 }
 0x44e   :  { %v5040_v29 = vpop.eup %5039 }
 0x456   :  { %v5042_v32 = vpop.eup %5041 }
 0x4a7   :  { %v462_v30 = vpop.permute.xlu1 %461 }
 0x4a8   :  { %v464_v31 = vmul.f32 %v5040_v29, %v462_v30 }
 0x4aa   :  { %466 = vrot.lane.b32.xlu1 %v464_v31, %s5231_s2 }
 0x4af   :  { %v635_v33 = vpop.permute.xlu0 %634 }
 0x4b0   :  { %v637_v34 = vmul.f32 %v5042_v32, %v635_v33 }
 0x4b2   :  { %639 = vrot.lane.b32.xlu0 %v637_v34, %s5231_s2 }
 0x51c   :  { %v467_v35 = vpop.permute.xlu1 %466 }
 0x51d   :  { %v469_v36 = vadd.f32 %v467_v35, %v376_v19 }
 0x51f   :  { %5043 = vtanh.f32 %v469_v36 }
 0x524   :  { %v640_v37 = vpop.permute.xlu0 %639 }
 0x525   :  { %v642_v39 = vadd.f32 %v640_v37, %v549_v22 }
 0x527   :  { %5045 = vtanh.f32 %v642_v39 }
 0x529   :  { %v5044_v40 = vpop.eup %5043 }
 0x52a   :  { %v471_v41 = vsub.f32 %v5442_v49, %v5044_v40  ;;  %v5516_v49 = vld [vmem:[%s6034_s9] ss:$0 sm:$0xff] }
 0x52c   :  { %473 = vrot.lane.b32.xlu1 %v471_v41, %s5230_s23 }
 0x531   :  { %v5046_v42 = vpop.eup %5045 }
 0x532   :  { %v644_v44 = vsub.f32 0.0, %v5046_v42 }
 0x534   :  { %646 = vrot.lane.b32.xlu0 %v644_v44, %s5230_s23 }
 0x59e   :  { %v474_v45 = vpop.permute.xlu1 %473 }
 0x59f   :  { %v476_v46 = vmul.f32 %v5040_v29, %v474_v45 }
 0x5a1   :  { %478 = vrot.lane.b32.xlu1 %v476_v46, %s5232_s4 }
 0x5a6   :  { %v647_v48 = vpop.permute.xlu0 %646 }
 0x5a7   :  { %v649_v50 = vmul.f32 %v5042_v32, %v647_v48 }
 0x5a9   :  { %651 = vrot.lane.b32.xlu0 %v649_v50, %s5232_s4 }
 0x613   :  { %v479_v51 = vpop.permute.xlu1 %478 }
 0x614   :  { %v5509_v52 = vadd.f32 %v5044_v40, %v479_v51 }
 0x616   :  { %657 = vrot.lane.b32.xlu1 %v5509_v52, %s5231_s2 }
 0x61a   :  { %1083 = vrot.lane.b32.xlu1 %v5516_v49, %s5230_s23 }
 0x61b   :  { %v652_v53 = vpop.permute.xlu0 %651 }
 0x61c   :  { %v5520_v54 = vadd.f32 %v5046_v42, %v652_v53 }
 0x61e   :  { %832 = vrot.lane.b32.xlu0 %v5520_v54, %s5231_s2 }
 0x688   :  { %v658_v60 = vpop.permute.xlu1 %657 }
 0x689   :  { %4375 = vmatmul.mubr.msk.f32.vlgmr.msra.gmra.mrb[10].mxu0 %vm269_vm4, %v658_v60  ;;  %4386 = vmatmul.mubr.msk.f32.vlgmr.msra.gmra.mrb[6].mxu1 %vm269_vm4, %v658_v60 }
 0x68a   :  { %4811 = vmatpush3.bf16.msra.mxu0 %v5464_v0  ;;  %4817 = vmatpush3.bf16.msra.mxu1 %v5530_v57 }
 0x68b   :  { %4812 = vmatprep.subr.bf16.mxu0 %v5227_v1  ;;  %4818 = vmatprep.subr.bf16.mxu1 %v5227_v1 }
 0x68c   :  { %4396 = vmatprep.mubr.msk.f32.mxu0 %vm5228_vm0, %v5229_v2  ;;  %4407 = vmatprep.mubr.msk.f32.mxu1 %vm5228_vm0, %v5229_v2  ;;  %v5583_v23 = vpop.permute.xlu1 %1083 }
 0x68e   :  { %4814 = vmatpush3.bf16.msra.mxu0 %v5475_v6  ;;  %4820 = vmatpush3.bf16.msra.mxu1 %v5542_v61 }
 0x68f   :  { %4821 = vmatprep.subr.bf16.mxu0 %v5227_v1  ;;  %4827 = vmatprep.subr.bf16.mxu1 %v5227_v1 }
 0x690   :  { %v833_v7 = vpop.permute.xlu0 %832 }
 0x691   :  { %4397 = vmatmul.mubr.msk.f32.vlgmr.msra.gmra.mrb[12].mxu0 %vm269_vm4, %v833_v7  ;;  %4408 = vmatmul.mubr.msk.f32.vlgmr.msra.gmra.mrb[8].mxu1 %vm269_vm4, %v833_v7 }
 0x692   :  { %4823 = vmatpush3.bf16.msra.mxu0 %v5552_v3  ;;  %4418 = vmatprep.mubr.msk.f32.mxu0 %vm5228_vm0, %v5229_v2 }
 0x693   :  { %4824 = vmatprep.subr.bf16.mxu0 %v5227_v1  ;;  %4829 = vmatpush3.bf16.msra.mxu1 %v5351_v9 }
 0x694   :  { %4830 = vmatprep.subr.bf16.mxu1 %v5227_v1  ;;  %4429 = vmatprep.mubr.msk.f32.mxu1 %vm5228_vm0, %v5229_v2 }
 0x696   :  { %4826 = vmatpush3.bf16.msra.mxu0 %v5559_v8 }
 0x697   :  { %4833 = vmatprep.subr.bf16.mxu0 %v5227_v1  ;;  %4832 = vmatpush3.bf16.msra.mxu1 %v5365_v12 }
 0x698   :  { %4839 = vmatprep.subr.bf16.mxu1 %v5227_v1 }
 0x699   :  { %4419 = vmatmul.mubr.f32.vlgmr.msra.gmra.mrb[14].mxu0 %v5229_v2 }
 0x69a   :  { %4835 = vmatpush3.bf16.msra.mxu0 %v5405_v38  ;;  %4440 = vmatprep.mubr.msk.f32.mxu0 %vm5228_vm0, %v5229_v2 }
 0x69b   :  { %4836 = vmatprep.subr.bf16.mxu0 %v5227_v1 }
 0x69e   :  { %4838 = vmatpush3.bf16.msra.mxu0 %v5421_v43 }
 0x69f   :  { %4845 = vmatprep.subr.bf16.mxu0 %v5227_v1 }
 0x75c   :  { %v727_v10 = vpop.f32.mrb[10].mxu0  ;;  %v827_v11 = vpop.f32.mrb[6].mxu1 }
 0x75d   :  { %v738_v13 = vadd.f32 %v727_v10, %v5382_v17  ;;  %v4376_v15 = vpop.f32.mrb[11].mxu0  ;;  %v4387_v16 = vpop.f32.mrb[7].mxu1  ;;  %v731_v28 = vadd.f32 %v727_v10, %v655_v27  ;;  %v828_v30 = vadd.f32 %v5438_v47, %v827_v11 }
 0x75f   :  { %740 = vrot.lane.b32.xlu0 %v738_v13, %s5231_s2  ;;  %v4037_v29 = vmul.f32 -1.442695, %v731_v28 }
 0x761   :  { %5047 = vpow2.f32 %v4037_v29 }
 0x764   :  { %v902_v18 = vpop.f32.mrb[12].mxu0  ;;  %v1002_v19 = vpop.f32.mrb[8].mxu1 }
 0x765   :  { %v913_v20 = vadd.f32 %v902_v18, %v5497_v14  ;;  %v4398_v21 = vpop.f32.mrb[13].mxu0  ;;  %v4409_v22 = vpop.f32.mrb[9].mxu1  ;;  %v906_v31 = vadd.f32 %v902_v18, %v828_v30  ;;  %v1003_v33 = vadd.f32 %v5516_v49, %v1002_v19 }
 0x767   :  { %915 = vrot.lane.b32.xlu1 %v913_v20, %s5231_s2  ;;  %v4040_v32 = vmul.f32 -1.442695, %v906_v31 }
 0x769   :  { %5049 = vpow2.f32 %v4040_v32 }
 0x76b   :  { %v5048_v35 = vpop.eup %5047 }
 0x76c   :  { %v1072_v24 = vpop.f32.mrb[14].mxu0  ;;  %v735_v37 = vadd.f32 1.0, %v5048_v35 }
 0x76d   :  { %v1086_v25 = vadd.f32 %v5583_v23, %v1072_v24  ;;  %v4420_v26 = vpop.f32.mrb[15].mxu0  ;;  %v1076_v34 = vadd.f32 %v1072_v24, %v1003_v33 }
 0x76f   :  { %1088 = vrot.lane.b32.xlu0 %v1086_v25, %s5231_s2  ;;  %v4042_v36 = vmul.f32 -1.442695, %v1076_v34 }
 0x771   :  { %5051 = vpow2.f32 %v4042_v36 }
 0x772   :  { %5053 = vrcp.f32 %v735_v37 }
 0x773   :  { %v5050_v39 = vpop.eup %5049 }
 0x774   :  { %v910_v40 = vadd.f32 1.0, %v5050_v39 }
 0x776   :  { %5055 = vrcp.f32 %v910_v40 }
 0x77b   :  { %v5052_v41 = vpop.eup %5051 }
 0x77c   :  { %v5054_v42 = vpop.eup %5053  ;;  %v1080_v46 = vadd.f32 1.0, %v5052_v41 }
 0x77e   :  { %5057 = vrcp.f32 %v1080_v46  ;;  %v1109_v46 = vld [vmem:[#allocation2 + $0x18] sm:$0xff] }
 0x780   :  { %v5056_v48 = vpop.eup %5055 }
 0x788   :  { %v5058_v53 = vpop.eup %5057 }
 0x7d1   :  { %v741_v44 = vpop.permute.xlu0 %740 }
 0x7d2   :  { %v743_v45 = vmul.f32 %v5054_v42, %v741_v44 }
 0x7d4   :  { %745 = vrot.lane.b32.xlu1 %v743_v45, %s5231_s2 }
 0x7d9   :  { %v916_v50 = vpop.permute.xlu1 %915 }
 0x7da   :  { %v918_v51 = vmul.f32 %v5056_v48, %v916_v50 }
 0x7dc   :  { %920 = vrot.lane.b32.xlu0 %v918_v51, %s5231_s2 }
 0x7e1   :  { %v1089_v55 = vpop.permute.xlu0 %1088 }
 0x7e2   :  { %v1091_v56 = vmul.f32 %v5058_v53, %v1089_v55 }
 0x7e4   :  { %1093 = vrot.lane.b32.xlu1 %v1091_v56, %s5231_s2 }
 0x846   :  { %v746_v58 = vpop.permute.xlu1 %745 }
 0x847   :  { %v748_v59 = vadd.f32 %v746_v58, %v655_v27 }
 0x849   :  { %5059 = vtanh.f32 %v748_v59 }
 0x84e   :  { %v921_v60 = vpop.permute.xlu0 %920 }
 0x84f   :  { %v923_v62 = vadd.f32 %v921_v60, %v828_v30 }
 0x851   :  { %5061 = vtanh.f32 %v923_v62 }
 0x853   :  { %v5060_v63 = vpop.eup %5059 }
 0x854   :  { %v750_v4 = vsub.f32 %v5509_v52, %v5060_v63 }
 0x856   :  { %v1094_v5 = vpop.permute.xlu1 %1093  ;;  %752 = vrot.lane.b32.xlu0 %v750_v4, %s5230_s23 }
 0x857   :  { %v1096_v7 = vadd.f32 %v1094_v5, %v1003_v33 }
 0x859   :  { %5063 = vtanh.f32 %v1096_v7 }
 0x85b   :  { %v5062_v10 = vpop.eup %5061 }
 0x85c   :  { %v925_v11 = vsub.f32 %v5520_v54, %v5062_v10 }
 0x85e   :  { %927 = vrot.lane.b32.xlu1 %v925_v11, %s5230_s23 }
 0x863   :  { %v5064_v13 = vpop.eup %5063 }
 0x864   :  { %v1098_v15 = vsub.f32 0.0, %v5064_v13 }
 0x866   :  { %1100 = vrot.lane.b32.xlu0 %v1098_v15, %s5230_s23 }
 0x8c8   :  { %v753_v16 = vpop.permute.xlu0 %752 }
 0x8c9   :  { %v755_v18 = vmul.f32 %v5054_v42, %v753_v16 }
 0x8cb   :  { %757 = vrot.lane.b32.xlu1 %v755_v18, %s5232_s4 }
 0x8d0   :  { %v928_v19 = vpop.permute.xlu1 %927 }
 0x8d1   :  { %v930_v52 = vmul.f32 %v5056_v48, %v928_v19 }
 0x8d3   :  { %932 = vrot.lane.b32.xlu0 %v930_v52, %s5232_s4 }
 0x8d8   :  { %v1101_v20 = vpop.permute.xlu0 %1100 }
 0x8d9   :  { %v1103_v21 = vmul.f32 %v5058_v53, %v1101_v20 }
 0x8db   :  { %1105 = vrot.lane.b32.xlu1 %v1103_v21, %s5232_s4 }
 0x93d   :  { %v758_v22 = vpop.permute.xlu1 %757 }
 0x93e   :  { %v5600_v54 = vadd.f32 %v5060_v63, %v758_v22 }
 0x940   :  { %1111 = vrot.lane.b32.xlu0 %v5600_v54, %s5231_s2 }
 0x945   :  { %v933_v24 = vpop.permute.xlu0 %932 }
 0x946   :  { %v5604_v25 = vadd.f32 %v5062_v10, %v933_v24 }
 0x948   :  { %1286 = vrot.lane.b32.xlu1 %v5604_v25, %s5231_s2 }
 0x94d   :  { %v1106_v26 = vpop.permute.xlu1 %1105 }
 0x94e   :  { %v5608_v27 = vadd.f32 %v5064_v13, %v1106_v26 }
 0x950   :  { %1461 = vrot.lane.b32.xlu0 %v5608_v27, %s5231_s2 }
 0x9b2   :  { %v1112_v28 = vpop.permute.xlu0 %1111 }
 0x9b3   :  { %4430 = vmatmul.mubr.msk.f32.vlgmr.msra.gmra.mrb[10].mxu1 %vm269_vm4, %v1112_v28  ;;  %4441 = vmatmul.mubr.msk.f32.vlgmr.msra.gmra.mrb[16].mxu0 %vm269_vm4, %v1112_v28 }
 0x9b4   :  { %4841 = vmatpush3.bf16.msra.mxu1 %v5464_v0  ;;  %4847 = vmatpush3.bf16.msra.mxu0 %v5530_v57 }
 0x9b5   :  { %4842 = vmatprep.subr.bf16.mxu1 %v5227_v1  ;;  %4848 = vmatprep.subr.bf16.mxu0 %v5227_v1 }
 0x9b6   :  { %4451 = vmatprep.mubr.msk.f32.mxu1 %vm5228_vm0, %v5229_v2  ;;  %4462 = vmatprep.mubr.msk.f32.mxu0 %vm5228_vm0, %v5229_v2 }
 0x9b8   :  { %4844 = vmatpush3.bf16.msra.mxu1 %v5475_v6  ;;  %4850 = vmatpush3.bf16.msra.mxu0 %v5542_v61 }
 0x9b9   :  { %4851 = vmatprep.subr.bf16.mxu1 %v5227_v1  ;;  %4857 = vmatprep.subr.bf16.mxu0 %v5227_v1 }
 0x9ba   :  { %v1287_v29 = vpop.permute.xlu1 %1286 }
 0x9bb   :  { %4452 = vmatmul.mubr.msk.f32.vlgmr.msra.gmra.mrb[12].mxu1 %vm269_vm4, %v1287_v29  ;;  %4463 = vmatmul.mubr.msk.f32.vlgmr.msra.gmra.mrb[18].mxu0 %vm269_vm4, %v1287_v29 }
 0x9bc   :  { %4853 = vmatpush3.bf16.msra.mxu1 %v5552_v3  ;;  %4473 = vmatprep.mubr.msk.f32.mxu1 %vm5228_vm0, %v5229_v2 }
 0x9bd   :  { %4854 = vmatprep.subr.bf16.mxu1 %v5227_v1  ;;  %4859 = vmatpush3.bf16.msra.mxu0 %v5351_v9 }
 0x9be   :  { %4860 = vmatprep.subr.bf16.mxu0 %v5227_v1  ;;  %4484 = vmatprep.mubr.msk.f32.mxu0 %vm5228_vm0, %v5229_v2 }
 0x9c0   :  { %4856 = vmatpush3.bf16.msra.mxu1 %v5559_v8 }
 0x9c1   :  { %4863 = vmatprep.subr.bf16.mxu1 %v5227_v1  ;;  %4862 = vmatpush3.bf16.msra.mxu0 %v5365_v12 }
 0x9c2   :  { %v1462_v30 = vpop.permute.xlu0 %1461  ;;  %4869 = vmatprep.subr.bf16.mxu0 %v5227_v1 }
 0x9c3   :  { %4474 = vmatmul.mubr.msk.f32.vlgmr.msra.gmra.mrb[14].mxu1 %vm269_vm4, %v1462_v30 }
 0x9c4   :  { %4865 = vmatpush3.bf16.msra.mxu1 %v5405_v38  ;;  %4495 = vmatprep.mubr.msk.f32.mxu1 %vm5228_vm0, %v5229_v2 }
 0x9c5   :  { %4866 = vmatprep.subr.bf16.mxu1 %v5227_v1 }
 0x9c8   :  { %4868 = vmatpush3.bf16.msra.mxu1 %v5421_v43 }
 0x9c9   :  { %4875 = vmatprep.subr.bf16.mxu1 %v5227_v1 }
 0xa86   :  { %v1181_v31 = vpop.f32.mrb[10].mxu1  ;;  %v1281_v32 = vpop.f32.mrb[16].mxu0 }
 0xa87   :  { %v1192_v33 = vadd.f32 %v1181_v31, %v5382_v17  ;;  %v4431_v34 = vpop.f32.mrb[11].mxu1  ;;  %v4442_v35 = vpop.f32.mrb[17].mxu0  ;;  %v1185_v48 = vadd.f32 %v1181_v31, %v1109_v46  ;;  %v1282_v51 = vadd.f32 %v5438_v47, %v1281_v32 }
 0xa89   :  { %1194 = vrot.lane.b32.xlu1 %v1192_v33, %s5231_s2  ;;  %v4044_v50 = vmul.f32 -1.442695, %v1185_v48 }
 0xa8b   :  { %5065 = vpow2.f32 %v4044_v50 }
 0xa8e   :  { %v1356_v36 = vpop.f32.mrb[12].mxu1  ;;  %v1456_v37 = vpop.f32.mrb[18].mxu0 }
 0xa8f   :  { %v1367_v39 = vadd.f32 %v1356_v36, %v5497_v14  ;;  %v4453_v40 = vpop.f32.mrb[13].mxu1  ;;  %v4464_v41 = vpop.f32.mrb[19].mxu0  ;;  %v1360_v53 = vadd.f32 %v1356_v36, %v1282_v51  ;;  %v1457_v56 = vadd.f32 %v5516_v49, %v1456_v37 }
 0xa91   :  { %1369 = vrot.lane.b32.xlu0 %v1367_v39, %s5231_s2  ;;  %v4047_v55 = vmul.f32 -1.442695, %v1360_v53 }
 0xa93   :  { %5067 = vpow2.f32 %v4047_v55 }
 0xa95   :  { %v5066_v59 = vpop.eup %5065 }
 0xa96   :  { %v1531_v42 = vpop.f32.mrb[14].mxu1  ;;  %v1189_v62 = vadd.f32 1.0, %v5066_v59 }
 0xa97   :  { %v1542_v44 = vadd.f32 %v1531_v42, %v5583_v23  ;;  %v4475_v45 = vpop.f32.mrb[15].mxu1  ;;  %v1535_v58 = vadd.f32 %v1531_v42, %v1457_v56 }
 0xa99   :  { %1544 = vrot.lane.b32.xlu1 %v1542_v44, %s5231_s2  ;;  %v4050_v60 = vmul.f32 -1.442695, %v1535_v58 }
 0xa9b   :  { %5069 = vpow2.f32 %v4050_v60 }
 0xa9c   :  { %5071 = vrcp.f32 %v1189_v62 }
 0xa9d   :  { %v5068_v63 = vpop.eup %5067 }
 0xa9e   :  { %v1364_v4 = vadd.f32 1.0, %v5068_v63 }
 0xaa0   :  { %5073 = vrcp.f32 %v1364_v4 }
 0xaa5   :  { %v5070_v5 = vpop.eup %5069 }
 0xaa6   :  { %v5072_v7 = vpop.eup %5071  ;;  %v1539_v13 = vadd.f32 1.0, %v5070_v5 }
 0xaa8   :  { %5075 = vrcp.f32 %v1539_v13  ;;  %v1565_v13 = vld [vmem:[#allocation2 + $0x20] sm:$0xff] }
 0xaaa   :  { %v5074_v15 = vpop.eup %5073 }
 0xab2   :  { %v5076_v19 = vpop.eup %5075 }
 0xafb   :  { %v1195_v10 = vpop.permute.xlu1 %1194 }
 0xafc   :  { %v1197_v11 = vmul.f32 %v5072_v7, %v1195_v10 }
 0xafe   :  { %1199 = vrot.lane.b32.xlu0 %v1197_v11, %s5231_s2 }
 0xb03   :  { %v1370_v16 = vpop.permute.xlu0 %1369 }
 0xb04   :  { %v1372_v18 = vmul.f32 %v5074_v15, %v1370_v16 }
 0xb06   :  { %1374 = vrot.lane.b32.xlu1 %v1372_v18, %s5231_s2 }
 0xb0b   :  { %v1545_v52 = vpop.permute.xlu1 %1544 }
 0xb0c   :  { %v1547_v20 = vmul.f32 %v5076_v19, %v1545_v52 }
 0xb0e   :  { %1549 = vrot.lane.b32.xlu0 %v1547_v20, %s5231_s2 }
 0xb70   :  { %v1200_v21 = vpop.permute.xlu0 %1199 }
 0xb71   :  { %v1202_v22 = vadd.f32 %v1200_v21, %v1109_v46 }
 0xb73   :  { %5077 = vtanh.f32 %v1202_v22 }
 0xb78   :  { %v1375_v24 = vpop.permute.xlu1 %1374 }
 0xb79   :  { %v1377_v26 = vadd.f32 %v1375_v24, %v1282_v51 }
 0xb7b   :  { %5079 = vtanh.f32 %v1377_v26 }
 0xb7d   :  { %v5078_v28 = vpop.eup %5077 }
 0xb7e   :  { %v1204_v29 = vsub.f32 %v5600_v54, %v5078_v28 }
 0xb80   :  { %v1550_v30 = vpop.permute.xlu0 %1549  ;;  %1206 = vrot.lane.b32.xlu1 %v1204_v29, %s5230_s23 }
 0xb81   :  { %v1552_v31 = vadd.f32 %v1550_v30, %v1457_v56 }
 0xb83   :  { %5081 = vtanh.f32 %v1552_v31 }
 0xb85   :  { %v5080_v32 = vpop.eup %5079 }
 0xb86   :  { %v1379_v33 = vsub.f32 %v5604_v25, %v5080_v32 }
 0xb88   :  { %1381 = vrot.lane.b32.xlu0 %v1379_v33, %s5230_s23 }
 0xb8d   :  { %v5082_v34 = vpop.eup %5081 }
 0xb8e   :  { %v1554_v35 = vsub.f32 %v5608_v27, %v5082_v34 }
 0xb90   :  { %1556 = vrot.lane.b32.xlu1 %v1554_v35, %s5230_s23 }
 0xbf2   :  { %v1207_v36 = vpop.permute.xlu1 %1206 }
 0xbf3   :  { %v1209_v37 = vmul.f32 %v5072_v7, %v1207_v36 }
 0xbf5   :  { %1211 = vrot.lane.b32.xlu0 %v1209_v37, %s5232_s4 }
 0xbfa   :  { %v1382_v54 = vpop.permute.xlu0 %1381 }
 0xbfb   :  { %v1384_v39 = vmul.f32 %v5074_v15, %v1382_v54 }
 0xbfd   :  { %1386 = vrot.lane.b32.xlu1 %v1384_v39, %s5232_s4 }
 0xc02   :  { %v1557_v40 = vpop.permute.xlu1 %1556 }
 0xc03   :  { %v1559_v41 = vmul.f32 %v5076_v19, %v1557_v40 }
 0xc05   :  { %1561 = vrot.lane.b32.xlu0 %v1559_v41, %s5232_s4 }
 0xc67   :  { %v1212_v25 = vpop.permute.xlu0 %1211 }
 0xc68   :  { %v5667_v42 = vadd.f32 %v5078_v28, %v1212_v25 }
 0xc6a   :  { %1567 = vrot.lane.b32.xlu1 %v5667_v42, %s5231_s2 }
 0xc6f   :  { %v1387_v27 = vpop.permute.xlu1 %1386 }
 0xc70   :  { %v5671_v44 = vadd.f32 %v5080_v32, %v1387_v27 }
 0xc72   :  { %1742 = vrot.lane.b32.xlu0 %v5671_v44, %s5231_s2 }
 0xc77   :  { %v1562_v45 = vpop.permute.xlu0 %1561 }
 0xc78   :  { %v5675_v46 = vadd.f32 %v5082_v34, %v1562_v45 }
 0xc7a   :  { %1917 = vrot.lane.b32.xlu1 %v5675_v46, %s5231_s2 }
 0xcdc   :  { %v1568_v48 = vpop.permute.xlu1 %1567 }
 0xcdd   :  { %4485 = vmatmul.mubr.msk.f32.vlgmr.msra.gmra.mrb[20].mxu0 %vm269_vm4, %v1568_v48  ;;  %4496 = vmatmul.mubr.msk.f32.vlgmr.msra.gmra.mrb[16].mxu1 %vm269_vm4, %v1568_v48 }
 0xcde   :  { %4871 = vmatpush3.bf16.msra.mxu0 %v5464_v0  ;;  %4877 = vmatpush3.bf16.msra.mxu1 %v5530_v57 }
 0xcdf   :  { %4872 = vmatprep.subr.bf16.mxu0 %v5227_v1  ;;  %4878 = vmatprep.subr.bf16.mxu1 %v5227_v1 }
 0xce0   :  { %4506 = vmatprep.mubr.msk.f32.mxu0 %vm5228_vm0, %v5229_v2  ;;  %4517 = vmatprep.mubr.msk.f32.mxu1 %vm5228_vm0, %v5229_v2 }
 0xce2   :  { %4874 = vmatpush3.bf16.msra.mxu0 %v5475_v6  ;;  %4880 = vmatpush3.bf16.msra.mxu1 %v5542_v61 }
 0xce3   :  { %4881 = vmatprep.subr.bf16.mxu0 %v5227_v1  ;;  %4887 = vmatprep.subr.bf16.mxu1 %v5227_v1 }
 0xce4   :  { %v1743_v50 = vpop.permute.xlu0 %1742 }
 0xce5   :  { %4507 = vmatmul.mubr.msk.f32.vlgmr.msra.gmra.mrb[22].mxu0 %vm269_vm4, %v1743_v50  ;;  %4518 = vmatmul.mubr.msk.f32.vlgmr.msra.gmra.mrb[18].mxu1 %vm269_vm4, %v1743_v50 }
 0xce6   :  { %4883 = vmatpush3.bf16.msra.mxu0 %v5552_v3  ;;  %4528 = vmatprep.mubr.msk.f32.mxu0 %vm5228_vm0, %v5229_v2 }
 0xce7   :  { %4884 = vmatprep.subr.bf16.mxu0 %v5227_v1  ;;  %4889 = vmatpush3.bf16.msra.mxu1 %v5351_v9 }
 0xce8   :  { %4890 = vmatprep.subr.bf16.mxu1 %v5227_v1  ;;  %4539 = vmatprep.mubr.msk.f32.mxu1 %vm5228_vm0, %v5229_v2 }
 0xcea   :  { %4886 = vmatpush3.bf16.msra.mxu0 %v5559_v8 }
 0xceb   :  { %4893 = vmatprep.subr.bf16.mxu0 %v5227_v1  ;;  %4892 = vmatpush3.bf16.msra.mxu1 %v5365_v12 }
 0xcec   :  { %v1918_v51 = vpop.permute.xlu1 %1917  ;;  %4899 = vmatprep.subr.bf16.mxu1 %v5227_v1 }
 0xced   :  { %4529 = vmatmul.mubr.msk.f32.vlgmr.msra.gmra.mrb[24].mxu0 %vm269_vm4, %v1918_v51 }
 0xcee   :  { %4895 = vmatpush3.bf16.msra.mxu0 %v5405_v38  ;;  %4550 = vmatprep.mubr.msk.f32.mxu0 %vm5228_vm0, %v5229_v2 }
 0xcef   :  { %4896 = vmatprep.subr.bf16.mxu0 %v5227_v1 }
 0xcf2   :  { %4898 = vmatpush3.bf16.msra.mxu0 %v5421_v43 }
 0xcf3   :  { %4905 = vmatprep.subr.bf16.mxu0 %v5227_v1 }
 0xdb0   :  { %v1637_v53 = vpop.f32.mrb[20].mxu0  ;;  %v1737_v55 = vpop.f32.mrb[16].mxu1 }
 0xdb1   :  { %v1648_v56 = vadd.f32 %v1637_v53, %v5382_v17  ;;  %v4486_v58 = vpop.f32.mrb[21].mxu0  ;;  %v4497_v59 = vpop.f32.mrb[17].mxu1  ;;  %v1641_v15 = vadd.f32 %v1637_v53, %v1565_v13  ;;  %v1738_v18 = vadd.f32 %v5438_v47, %v1737_v55 }
 0xdb3   :  { %1650 = vrot.lane.b32.xlu0 %v1648_v56, %s5231_s2  ;;  %v4052_v16 = vmul.f32 -1.442695, %v1641_v15 }
 0xdb5   :  { %5083 = vpow2.f32 %v4052_v16 }
 0xdb8   :  { %v1812_v60 = vpop.f32.mrb[22].mxu0  ;;  %v1912_v62 = vpop.f32.mrb[18].mxu1 }
 0xdb9   :  { %v1823_v63 = vadd.f32 %v1812_v60, %v5497_v14  ;;  %v4508_v4 = vpop.f32.mrb[23].mxu0  ;;  %v4519_v5 = vpop.f32.mrb[19].mxu1  ;;  %v1816_v19 = vadd.f32 %v1812_v60, %v1738_v18  ;;  %v1913_v20 = vadd.f32 %v5516_v49, %v1912_v62 }
 0xdbb   :  { %1825 = vrot.lane.b32.xlu1 %v1823_v63, %s5231_s2  ;;  %v4055_v52 = vmul.f32 -1.442695, %v1816_v19 }
 0xdbd   :  { %5085 = vpow2.f32 %v4055_v52 }
 0xdbf   :  { %v5084_v22 = vpop.eup %5083 }
 0xdc0   :  { %v1987_v7 = vpop.f32.mrb[24].mxu0  ;;  %v1645_v26 = vadd.f32 1.0, %v5084_v22 }
 0xdc1   :  { %v1998_v10 = vadd.f32 %v1987_v7, %v5583_v23  ;;  %v4530_v11 = vpop.f32.mrb[25].mxu0  ;;  %v1991_v21 = vadd.f32 %v1987_v7, %v1913_v20 }
 0xdc3   :  { %2000 = vrot.lane.b32.xlu0 %v1998_v10, %s5231_s2  ;;  %v4058_v24 = vmul.f32 -1.442695, %v1991_v21 }
 0xdc5   :  { %5087 = vpow2.f32 %v4058_v24 }
 0xdc6   :  { %5089 = vrcp.f32 %v1645_v26 }
 0xdc7   :  { %v5086_v28 = vpop.eup %5085 }
 0xdc8   :  { %v1820_v29 = vadd.f32 1.0, %v5086_v28 }
 0xdca   :  { %5091 = vrcp.f32 %v1820_v29 }
 0xdcf   :  { %v5088_v30 = vpop.eup %5087 }
 0xdd0   :  { %v5090_v31 = vpop.eup %5089  ;;  %v1995_v47 = vadd.f32 1.0, %v5088_v30 }
 0xdd2   :  { %5093 = vrcp.f32 %v1995_v47 }
 0xdd4   :  { %v5092_v34 = vpop.eup %5091 }
 0xddc   :  { %v5094_v37 = vpop.eup %5093 }
 0xe25   :  { %v1651_v32 = vpop.permute.xlu0 %1650 }
 0xe26   :  { %v1653_v33 = vmul.f32 %v5090_v31, %v1651_v32 }
 0xe28   :  { %1655 = vrot.lane.b32.xlu1 %v1653_v33, %s5231_s2  ;;  %v2021_v33 = vld [vmem:[#allocation2 + $0x28] sm:$0xff] }
 0xe2d   :  { %v1826_v35 = vpop.permute.xlu1 %1825 }
 0xe2e   :  { %v1828_v36 = vmul.f32 %v5092_v34, %v1826_v35  ;;  %v5790_v35 = vld [vmem:[%s6031_s6] ss:$0 sm:$0xff] }
 0xe30   :  { %1830 = vrot.lane.b32.xlu0 %v1828_v36, %s5231_s2 }
 0xe35   :  { %v2001_v54 = vpop.permute.xlu0 %2000 }
 0xe36   :  { %v2003_v39 = vmul.f32 %v5094_v37, %v2001_v54 }
 0xe38   :  { %2005 = vrot.lane.b32.xlu1 %v2003_v39, %s5231_s2 }
 0xe9a   :  { %v1656_v40 = vpop.permute.xlu1 %1655 }
 0xe9b   :  { %v1658_v41 = vadd.f32 %v1656_v40, %v1565_v13 }
 0xe9d   :  { %5095 = vtanh.f32 %v1658_v41 }
 0xea2   :  { %v1831_v25 = vpop.permute.xlu0 %1830 }
 0xea3   :  { %v1833_v27 = vadd.f32 %v1831_v25, %v1738_v18 }
 0xea5   :  { %5097 = vtanh.f32 %v1833_v27 }
 0xea7   :  { %v5096_v45 = vpop.eup %5095 }
 0xea8   :  { %v1660_v48 = vsub.f32 %v5667_v42, %v5096_v45 }
 0xeaa   :  { %v2006_v50 = vpop.permute.xlu1 %2005  ;;  %1662 = vrot.lane.b32.xlu0 %v1660_v48, %s5230_s23 }
 0xeab   :  { %v2008_v51 = vadd.f32 %v2006_v50, %v1913_v20 }
 0xead   :  { %5099 = vtanh.f32 %v2008_v51 }
 0xeaf   :  { %v5098_v53 = vpop.eup %5097 }
 0xeb0   :  { %v1835_v55 = vsub.f32 %v5671_v44, %v5098_v53 }
 0xeb2   :  { %1837 = vrot.lane.b32.xlu1 %v1835_v55, %s5230_s23 }
 0xeb7   :  { %v5100_v56 = vpop.eup %5099 }
 0xeb8   :  { %v2010_v58 = vsub.f32 %v5675_v46, %v5100_v56 }
 0xeba   :  { %2012 = vrot.lane.b32.xlu0 %v2010_v58, %s5230_s23 }
 0xf1c   :  { %v1663_v59 = vpop.permute.xlu0 %1662 }
 0xf1d   :  { %v1665_v60 = vmul.f32 %v5090_v31, %v1663_v59 }
 0xf1f   :  { %1667 = vrot.lane.b32.xlu1 %v1665_v60, %s5232_s4 }
 0xf24   :  { %v1838_v42 = vpop.permute.xlu1 %1837 }
 0xf25   :  { %v1840_v62 = vmul.f32 %v5092_v34, %v1838_v42 }
 0xf27   :  { %1842 = vrot.lane.b32.xlu0 %v1840_v62, %s5232_s4 }
 0xf2c   :  { %v2013_v63 = vpop.permute.xlu0 %2012 }
 0xf2d   :  { %v2015_v4 = vmul.f32 %v5094_v37, %v2013_v63 }
 0xf2f   :  { %2017 = vrot.lane.b32.xlu1 %v2015_v4, %s5232_s4 }
 0xf91   :  { %v1668_v44 = vpop.permute.xlu1 %1667 }
 0xf92   :  { %v5734_v5 = vadd.f32 %v5096_v45, %v1668_v44 }
 0xf94   :  { %2023 = vrot.lane.b32.xlu0 %v5734_v5, %s5231_s2 }
 0xf99   :  { %v1843_v46 = vpop.permute.xlu0 %1842 }
 0xf9a   :  { %v5738_v7 = vadd.f32 %v5098_v53, %v1843_v46 }
 0xf9c   :  { %2198 = vrot.lane.b32.xlu1 %v5738_v7, %s5231_s2 }
 0xfa1   :  { %v2018_v10 = vpop.permute.xlu1 %2017 }
 0xfa2   :  { %v5742_v11 = vadd.f32 %v5100_v56, %v2018_v10 }
 0xfa4   :  { %2373 = vrot.lane.b32.xlu0 %v5742_v11, %s5231_s2 }
0x1006   :  { %v2024_v13 = vpop.permute.xlu0 %2023 }
0x1007   :  { %4540 = vmatmul.mubr.msk.f32.vlgmr.msra.gmra.mrb[20].mxu1 %vm269_vm4, %v2024_v13  ;;  %4551 = vmatmul.mubr.msk.f32.vlgmr.msra.gmra.mrb[26].mxu0 %vm269_vm4, %v2024_v13 }
0x1008   :  { %4901 = vmatpush3.bf16.msra.mxu1 %v5464_v0  ;;  %4907 = vmatpush3.bf16.msra.mxu0 %v5530_v57 }
0x1009   :  { %4902 = vmatprep.subr.bf16.mxu1 %v5227_v1  ;;  %4908 = vmatprep.subr.bf16.mxu0 %v5227_v1 }
0x100a   :  { %4561 = vmatprep.mubr.msk.f32.mxu1 %vm5228_vm0, %v5229_v2  ;;  %4572 = vmatprep.mubr.msk.f32.mxu0 %vm5228_vm0, %v5229_v2 }
0x100c   :  { %4904 = vmatpush3.bf16.msra.mxu1 %v5475_v6  ;;  %4910 = vmatpush3.bf16.msra.mxu0 %v5542_v61 }
0x100d   :  { %4911 = vmatprep.subr.bf16.mxu1 %v5227_v1  ;;  %4917 = vmatprep.subr.bf16.mxu0 %v5227_v1 }
0x100e   :  { %v2199_v15 = vpop.permute.xlu1 %2198 }
0x100f   :  { %4562 = vmatmul.mubr.msk.f32.vlgmr.msra.gmra.mrb[22].mxu1 %vm269_vm4, %v2199_v15  ;;  %4573 = vmatmul.mubr.msk.f32.vlgmr.msra.gmra.mrb[28].mxu0 %vm269_vm4, %v2199_v15 }
0x1010   :  { %4913 = vmatpush3.bf16.msra.mxu1 %v5552_v3  ;;  %4583 = vmatprep.mubr.msk.f32.mxu1 %vm5228_vm0, %v5229_v2 }
0x1011   :  { %4914 = vmatprep.subr.bf16.mxu1 %v5227_v1  ;;  %4919 = vmatpush3.bf16.msra.mxu0 %v5351_v9 }
0x1012   :  { %4920 = vmatprep.subr.bf16.mxu0 %v5227_v1  ;;  %4594 = vmatprep.mubr.msk.f32.mxu0 %vm5228_vm0, %v5229_v2 }
0x1014   :  { %4916 = vmatpush3.bf16.msra.mxu1 %v5559_v8 }
0x1015   :  { %4923 = vmatprep.subr.bf16.mxu1 %v5227_v1  ;;  %4922 = vmatpush3.bf16.msra.mxu0 %v5365_v12 }
0x1016   :  { %v2374_v16 = vpop.permute.xlu0 %2373  ;;  %4929 = vmatprep.subr.bf16.mxu0 %v5227_v1 }
0x1017   :  { %4584 = vmatmul.mubr.msk.f32.vlgmr.msra.gmra.mrb[24].mxu1 %vm269_vm4, %v2374_v16 }
0x1018   :  { %4925 = vmatpush3.bf16.msra.mxu1 %v5405_v38  ;;  %4605 = vmatprep.mubr.msk.f32.mxu1 %vm5228_vm0, %v5229_v2 }
0x1019   :  { %4926 = vmatprep.subr.bf16.mxu1 %v5227_v1 }
0x101c   :  { %4928 = vmatpush3.bf16.msra.mxu1 %v5421_v43 }
0x101d   :  { %4935 = vmatprep.subr.bf16.mxu1 %v5227_v1 }
0x10da   :  { %v2093_v18 = vpop.f32.mrb[20].mxu1  ;;  %v2193_v19 = vpop.f32.mrb[26].mxu0 }
0x10db   :  { %v2104_v52 = vadd.f32 %v2093_v18, %v5382_v17  ;;  %v4541_v20 = vpop.f32.mrb[21].mxu1  ;;  %v4552_v21 = vpop.f32.mrb[27].mxu0  ;;  %v2097_v47 = vadd.f32 %v2093_v18, %v2021_v33  ;;  %v2194_v36 = vadd.f32 %v5790_v35, %v2193_v19 }
0x10dd   :  { %2106 = vrot.lane.b32.xlu1 %v2104_v52, %s5231_s2  ;;  %v4060_v34 = vmul.f32 -1.442695, %v2097_v47 }
0x10df   :  { %5101 = vpow2.f32 %v4060_v34 }
0x10e2   :  { %v2268_v22 = vpop.f32.mrb[22].mxu1  ;;  %v2368_v24 = vpop.f32.mrb[28].mxu0 }
0x10e3   :  { %v2279_v26 = vadd.f32 %v2268_v22, %v5497_v14  ;;  %v4563_v28 = vpop.f32.mrb[23].mxu1  ;;  %v4574_v29 = vpop.f32.mrb[29].mxu0  ;;  %v2272_v37 = vadd.f32 %v2268_v22, %v2194_v36  ;;  %v2369_v39 = vadd.f32 %v5516_v49, %v2368_v24 }
0x10e5   :  { %2281 = vrot.lane.b32.xlu0 %v2279_v26, %s5231_s2  ;;  %v4063_v54 = vmul.f32 -1.442695, %v2272_v37 }
0x10e7   :  { %5103 = vpow2.f32 %v4063_v54 }
0x10e9   :  { %v5102_v41 = vpop.eup %5101 }
0x10ea   :  { %v2443_v30 = vpop.f32.mrb[24].mxu1  ;;  %v2101_v27 = vadd.f32 1.0, %v5102_v41 }
0x10eb   :  { %v2454_v31 = vadd.f32 %v2443_v30, %v5583_v23  ;;  %v4585_v32 = vpop.f32.mrb[25].mxu1  ;;  %v2447_v40 = vadd.f32 %v2443_v30, %v2369_v39 }
0x10ed   :  { %2456 = vrot.lane.b32.xlu1 %v2454_v31, %s5231_s2  ;;  %v4066_v25 = vmul.f32 -1.442695, %v2447_v40 }
0x10ef   :  { %5105 = vpow2.f32 %v4066_v25 }
0x10f0   :  { %5107 = vrcp.f32 %v2101_v27 }
0x10f1   :  { %v5104_v45 = vpop.eup %5103 }
0x10f2   :  { %v2276_v48 = vadd.f32 1.0, %v5104_v45 }
0x10f4   :  { %5109 = vrcp.f32 %v2276_v48 }
0x10f9   :  { %v5106_v50 = vpop.eup %5105 }
0x10fa   :  { %v5108_v51 = vpop.eup %5107  ;;  %v2451_v56 = vadd.f32 1.0, %v5106_v50 }
0x10fc   :  { %5111 = vrcp.f32 %v2451_v56 }
0x10fe   :  { %v5110_v58 = vpop.eup %5109 }
0x1106   :  { %v5112_v60 = vpop.eup %5111 }
0x114f   :  { %v2107_v53 = vpop.permute.xlu1 %2106 }
0x1150   :  { %v2109_v55 = vmul.f32 %v5108_v51, %v2107_v53 }
0x1152   :  { %2111 = vrot.lane.b32.xlu0 %v2109_v55, %s5231_s2 }
0x1157   :  { %v2282_v49 = vpop.permute.xlu0 %2281 }
0x1158   :  { %v2284_v59 = vmul.f32 %v5110_v58, %v2282_v49 }
0x115a   :  { %2286 = vrot.lane.b32.xlu1 %v2284_v59, %s5231_s2  ;;  %v5863_v59 = vld [vmem:[%s6034_s9] ss:$0 sm:$0xff] }
0x115f   :  { %v2457_v42 = vpop.permute.xlu1 %2456 }
0x1160   :  { %v2459_v62 = vmul.f32 %v5112_v60, %v2457_v42 }
0x1162   :  { %2461 = vrot.lane.b32.xlu0 %v2459_v62, %s5231_s2 }
0x11c4   :  { %v2112_v63 = vpop.permute.xlu0 %2111 }
0x11c5   :  { %v2114_v4 = vadd.f32 %v2112_v63, %v2021_v33 }
0x11c7   :  { %5113 = vtanh.f32 %v2114_v4 }
0x11cc   :  { %v2287_v44 = vpop.permute.xlu1 %2286 }
0x11cd   :  { %v2289_v46 = vadd.f32 %v2287_v44, %v2194_v36 }
0x11cf   :  { %5115 = vtanh.f32 %v2289_v46 }
0x11d1   :  { %v5114_v10 = vpop.eup %5113 }
0x11d2   :  { %v2116_v13 = vsub.f32 %v5734_v5, %v5114_v10 }
0x11d4   :  { %v2462_v15 = vpop.permute.xlu0 %2461  ;;  %2118 = vrot.lane.b32.xlu1 %v2116_v13, %s5230_s23 }
0x11d5   :  { %v2464_v16 = vadd.f32 %v2462_v15, %v2369_v39 }
0x11d7   :  { %5117 = vtanh.f32 %v2464_v16 }
0x11d9   :  { %v5116_v18 = vpop.eup %5115 }
0x11da   :  { %v2291_v19 = vsub.f32 %v5738_v7, %v5116_v18 }
0x11dc   :  { %2293 = vrot.lane.b32.xlu0 %v2291_v19, %s5230_s23 }
0x11e1   :  { %v5118_v52 = vpop.eup %5117 }
0x11e2   :  { %v2466_v20 = vsub.f32 %v5742_v11, %v5118_v52 }
0x11e4   :  { %2468 = vrot.lane.b32.xlu1 %v2466_v20, %s5230_s23 }
0x1246   :  { %v2119_v21 = vpop.permute.xlu1 %2118 }
0x1247   :  { %v2121_v22 = vmul.f32 %v5108_v51, %v2119_v21  ;;  %v2477_v51 = vld [vmem:[#allocation2 + $0x30] sm:$0xff] }
0x1249   :  { %2123 = vrot.lane.b32.xlu0 %v2121_v22, %s5232_s4 }
0x124e   :  { %v2294_v5 = vpop.permute.xlu0 %2293 }
0x124f   :  { %v2296_v24 = vmul.f32 %v5110_v58, %v2294_v5 }
0x1251   :  { %2298 = vrot.lane.b32.xlu1 %v2296_v24, %s5232_s4 }
0x1256   :  { %v2469_v26 = vpop.permute.xlu1 %2468 }
0x1257   :  { %v2471_v28 = vmul.f32 %v5112_v60, %v2469_v26 }
0x1259   :  { %2473 = vrot.lane.b32.xlu0 %v2471_v28, %s5232_s4 }
0x12bb   :  { %v2124_v7 = vpop.permute.xlu0 %2123 }
0x12bc   :  { %v5806_v29 = vadd.f32 %v5114_v10, %v2124_v7 }
0x12be   :  { %2479 = vrot.lane.b32.xlu1 %v5806_v29, %s5231_s2 }
0x12c3   :  { %v2299_v11 = vpop.permute.xlu1 %2298 }
0x12c4   :  { %v5810_v30 = vadd.f32 %v5116_v18, %v2299_v11 }
0x12c6   :  { %2654 = vrot.lane.b32.xlu0 %v5810_v30, %s5231_s2 }
0x12cb   :  { %v2474_v31 = vpop.permute.xlu0 %2473 }
0x12cc   :  { %v5814_v32 = vadd.f32 %v5118_v52, %v2474_v31 }
0x12ce   :  { %2829 = vrot.lane.b32.xlu1 %v5814_v32, %s5231_s2 }
0x1330   :  { %v2480_v33 = vpop.permute.xlu1 %2479 }
0x1331   :  { %4595 = vmatmul.mubr.msk.f32.vlgmr.msra.gmra.mrb[30].mxu0 %vm269_vm4, %v2480_v33  ;;  %4606 = vmatmul.mubr.msk.f32.vlgmr.msra.gmra.mrb[26].mxu1 %vm269_vm4, %v2480_v33 }
0x1332   :  { %4931 = vmatpush3.bf16.msra.mxu0 %v5464_v0  ;;  %4937 = vmatpush3.bf16.msra.mxu1 %v5530_v57 }
0x1333   :  { %4932 = vmatprep.subr.bf16.mxu0 %v5227_v1  ;;  %4938 = vmatprep.subr.bf16.mxu1 %v5227_v1 }
0x1334   :  { %4616 = vmatprep.mubr.msk.f32.mxu0 %vm5228_vm0, %v5229_v2  ;;  %4627 = vmatprep.mubr.msk.f32.mxu1 %vm5228_vm0, %v5229_v2 }
0x1336   :  { %4934 = vmatpush3.bf16.msra.mxu0 %v5475_v6  ;;  %4940 = vmatpush3.bf16.msra.mxu1 %v5542_v61 }
0x1337   :  { %4941 = vmatprep.subr.bf16.mxu0 %v5227_v1  ;;  %4947 = vmatprep.subr.bf16.mxu1 %v5227_v1 }
0x1338   :  { %v2655_v47 = vpop.permute.xlu0 %2654 }
0x1339   :  { %4617 = vmatmul.mubr.msk.f32.vlgmr.msra.gmra.mrb[32].mxu0 %vm269_vm4, %v2655_v47  ;;  %4628 = vmatmul.mubr.msk.f32.vlgmr.msra.gmra.mrb[28].mxu1 %vm269_vm4, %v2655_v47 }
0x133a   :  { %4943 = vmatpush3.bf16.msra.mxu0 %v5552_v3  ;;  %4638 = vmatprep.mubr.msk.f32.mxu0 %vm5228_vm0, %v5229_v2 }
0x133b   :  { %4944 = vmatprep.subr.bf16.mxu0 %v5227_v1  ;;  %4949 = vmatpush3.bf16.msra.mxu1 %v5351_v9 }
0x133c   :  { %4950 = vmatprep.subr.bf16.mxu1 %v5227_v1  ;;  %4649 = vmatprep.mubr.msk.f32.mxu1 %vm5228_vm0, %v5229_v2 }
0x133e   :  { %4946 = vmatpush3.bf16.msra.mxu0 %v5559_v8 }
0x133f   :  { %4953 = vmatprep.subr.bf16.mxu0 %v5227_v1  ;;  %4952 = vmatpush3.bf16.msra.mxu1 %v5365_v12 }
0x1340   :  { %v2830_v34 = vpop.permute.xlu1 %2829  ;;  %4959 = vmatprep.subr.bf16.mxu1 %v5227_v1 }
0x1341   :  { %4639 = vmatmul.mubr.msk.f32.vlgmr.msra.gmra.mrb[34].mxu0 %vm269_vm4, %v2830_v34 }
0x1342   :  { %4955 = vmatpush3.bf16.msra.mxu0 %v5405_v38  ;;  %4660 = vmatprep.mubr.msk.f32.mxu0 %vm5228_vm0, %v5229_v2 }
0x1343   :  { %4956 = vmatprep.subr.bf16.mxu0 %v5227_v1 }
0x1346   :  { %4958 = vmatpush3.bf16.msra.mxu0 %v5421_v43 }
0x1347   :  { %4965 = vmatprep.subr.bf16.mxu0 %v5227_v1 }
0x1404   :  { %v2549_v9 = vpop.f32.mrb[30].mxu0  ;;  %v2649_v36 = vpop.f32.mrb[26].mxu1 }
0x1405   :  { %v2560_v12 = vadd.f32 %v2549_v9, %v5382_v17  ;;  %v4596_v37 = vpop.f32.mrb[31].mxu0  ;;  %v4607_v54 = vpop.f32.mrb[27].mxu1  ;;  %v2553_v53 = vadd.f32 %v2549_v9, %v2477_v51  ;;  %v2650_v56 = vadd.f32 %v5790_v35, %v2649_v36 }
0x1407   :  { %2562 = vrot.lane.b32.xlu0 %v2560_v12, %s5231_s2  ;;  %v4068_v55 = vmul.f32 -1.442695, %v2553_v53 }
0x1409   :  { %5119 = vpow2.f32 %v4068_v55 }
0x140c   :  { %v2724_v39 = vpop.f32.mrb[32].mxu0  ;;  %v2824_v40 = vpop.f32.mrb[28].mxu1 }
0x140d   :  { %v2735_v41 = vadd.f32 %v2724_v39, %v5497_v14  ;;  %v4618_v25 = vpop.f32.mrb[33].mxu0  ;;  %v4629_v27 = vpop.f32.mrb[29].mxu1  ;;  %v2728_v58 = vadd.f32 %v2724_v39, %v2650_v56  ;;  %v2825_v60 = vadd.f32 %v5863_v59, %v2824_v40 }
0x140f   :  { %2737 = vrot.lane.b32.xlu1 %v2735_v41, %s5231_s2  ;;  %v4071_v49 = vmul.f32 -1.442695, %v2728_v58 }
0x1411   :  { %5121 = vpow2.f32 %v4071_v49 }
0x1413   :  { %v5120_v62 = vpop.eup %5119 }
0x1414   :  { %v2899_v45 = vpop.f32.mrb[34].mxu0  ;;  %v2557_v4 = vadd.f32 1.0, %v5120_v62 }
0x1415   :  { %v2910_v48 = vadd.f32 %v2899_v45, %v5583_v23  ;;  %v4640_v50 = vpop.f32.mrb[35].mxu0  ;;  %v2903_v42 = vadd.f32 %v2899_v45, %v2825_v60 }
0x1417   :  { %2912 = vrot.lane.b32.xlu0 %v2910_v48, %s5231_s2  ;;  %v4074_v63 = vmul.f32 -1.442695, %v2903_v42 }
0x1419   :  { %5123 = vpow2.f32 %v4074_v63 }
0x141a   :  { %5125 = vrcp.f32 %v2557_v4 }
0x141b   :  { %v5122_v44 = vpop.eup %5121 }
0x141c   :  { %v2732_v46 = vadd.f32 1.0, %v5122_v44 }
0x141e   :  { %5127 = vrcp.f32 %v2732_v46 }
0x1423   :  { %v5124_v10 = vpop.eup %5123 }
0x1424   :  { %v5126_v13 = vpop.eup %5125  ;;  %v2907_v18 = vadd.f32 1.0, %v5124_v10  ;;  %v2933_v10 = vld [vmem:[#allocation2 + $0x38] sm:$0xff] }
0x1426   :  { %5129 = vrcp.f32 %v2907_v18 }
0x1428   :  { %v5128_v19 = vpop.eup %5127 }
0x1430   :  { %v5130_v21 = vpop.eup %5129 }
0x1479   :  { %v2563_v15 = vpop.permute.xlu0 %2562 }
0x147a   :  { %v2565_v16 = vmul.f32 %v5126_v13, %v2563_v15 }
0x147c   :  { %2567 = vrot.lane.b32.xlu1 %v2565_v16, %s5231_s2 }
0x1481   :  { %v2738_v52 = vpop.permute.xlu1 %2737 }
0x1482   :  { %v2740_v20 = vmul.f32 %v5128_v19, %v2738_v52 }
0x1484   :  { %2742 = vrot.lane.b32.xlu0 %v2740_v20, %s5231_s2 }
0x1489   :  { %v2913_v22 = vpop.permute.xlu0 %2912 }
0x148a   :  { %v2915_v5 = vmul.f32 %v5130_v21, %v2913_v22 }
0x148c   :  { %2917 = vrot.lane.b32.xlu1 %v2915_v5, %s5231_s2 }
0x14ee   :  { %v2568_v24 = vpop.permute.xlu1 %2567 }
0x14ef   :  { %v2570_v26 = vadd.f32 %v2568_v24, %v2477_v51 }
0x14f1   :  { %5131 = vtanh.f32 %v2570_v26 }
0x14f6   :  { %v2743_v28 = vpop.permute.xlu0 %2742 }
0x14f7   :  { %v2745_v7 = vadd.f32 %v2743_v28, %v2650_v56 }
0x14f9   :  { %5133 = vtanh.f32 %v2745_v7 }
0x14fb   :  { %v5132_v11 = vpop.eup %5131 }
0x14fc   :  { %v2572_v31 = vsub.f32 %v5806_v29, %v5132_v11 }
0x14fe   :  { %v2918_v33 = vpop.permute.xlu1 %2917  ;;  %2574 = vrot.lane.b32.xlu0 %v2572_v31, %s5230_s23 }
0x14ff   :  { %v2920_v47 = vadd.f32 %v2918_v33, %v2825_v60 }
0x1501   :  { %5135 = vtanh.f32 %v2920_v47 }
0x1503   :  { %v5134_v34 = vpop.eup %5133 }
0x1504   :  { %v2747_v9 = vsub.f32 %v5810_v30, %v5134_v34 }
0x1506   :  { %2749 = vrot.lane.b32.xlu1 %v2747_v9, %s5230_s23 }
0x150b   :  { %v5136_v36 = vpop.eup %5135 }
0x150c   :  { %v2922_v12 = vsub.f32 %v5814_v32, %v5136_v36 }
0x150e   :  { %2924 = vrot.lane.b32.xlu0 %v2922_v12, %s5230_s23 }
0x1570   :  { %v2575_v37 = vpop.permute.xlu0 %2574 }
0x1571   :  { %v2577_v54 = vmul.f32 %v5126_v13, %v2575_v37 }
0x1573   :  { %2579 = vrot.lane.b32.xlu1 %v2577_v54, %s5232_s4 }
0x1578   :  { %v2750_v29 = vpop.permute.xlu1 %2749 }
0x1579   :  { %v2752_v39 = vmul.f32 %v5128_v19, %v2750_v29 }
0x157b   :  { %2754 = vrot.lane.b32.xlu0 %v2752_v39, %s5232_s4 }
0x1580   :  { %v2925_v40 = vpop.permute.xlu0 %2924 }
0x1581   :  { %v2927_v41 = vmul.f32 %v5130_v21, %v2925_v40 }
0x1583   :  { %2929 = vrot.lane.b32.xlu1 %v2927_v41, %s5232_s4 }
0x15e5   :  { %v2580_v30 = vpop.permute.xlu1 %2579 }
0x15e6   :  { %v5878_v25 = vadd.f32 %v5132_v11, %v2580_v30 }
0x15e8   :  { %2935 = vrot.lane.b32.xlu0 %v5878_v25, %s5231_s2 }
0x15ed   :  { %v2755_v32 = vpop.permute.xlu0 %2754 }
0x15ee   :  { %v5882_v27 = vadd.f32 %v5134_v34, %v2755_v32 }
0x15f0   :  { %3110 = vrot.lane.b32.xlu1 %v5882_v27, %s5231_s2 }
0x15f5   :  { %v2930_v45 = vpop.permute.xlu1 %2929 }
0x15f6   :  { %v5886_v48 = vadd.f32 %v5136_v36, %v2930_v45 }
0x15f8   :  { %3285 = vrot.lane.b32.xlu0 %v5886_v48, %s5231_s2 }
0x165a   :  { %v2936_v50 = vpop.permute.xlu0 %2935 }
0x165b   :  { %4650 = vmatmul.mubr.msk.f32.vlgmr.msra.gmra.mrb[30].mxu1 %vm269_vm4, %v2936_v50  ;;  %4661 = vmatmul.mubr.msk.f32.vlgmr.msra.gmra.mrb[36].mxu0 %vm269_vm4, %v2936_v50 }
0x165c   :  { %4961 = vmatpush3.bf16.msra.mxu1 %v5464_v0  ;;  %4967 = vmatpush3.bf16.msra.mxu0 %v5530_v57 }
0x165d   :  { %4962 = vmatprep.subr.bf16.mxu1 %v5227_v1  ;;  %4968 = vmatprep.subr.bf16.mxu0 %v5227_v1 }
0x165e   :  { %4671 = vmatprep.mubr.msk.f32.mxu1 %vm5228_vm0, %v5229_v2  ;;  %4682 = vmatprep.mubr.msk.f32.mxu0 %vm5228_vm0, %v5229_v2 }
0x1660   :  { %4964 = vmatpush3.bf16.msra.mxu1 %v5475_v6  ;;  %4970 = vmatpush3.bf16.msra.mxu0 %v5542_v61 }
0x1661   :  { %4971 = vmatprep.subr.bf16.mxu1 %v5227_v1  ;;  %4977 = vmatprep.subr.bf16.mxu0 %v5227_v1 }
0x1662   :  { %v3111_v51 = vpop.permute.xlu1 %3110 }
0x1663   :  { %4672 = vmatmul.mubr.msk.f32.vlgmr.msra.gmra.mrb[32].mxu1 %vm269_vm4, %v3111_v51  ;;  %4683 = vmatmul.mubr.msk.f32.vlgmr.msra.gmra.mrb[38].mxu0 %vm269_vm4, %v3111_v51 }
0x1664   :  { %4973 = vmatpush3.bf16.msra.mxu1 %v5552_v3  ;;  %4693 = vmatprep.mubr.msk.f32.mxu1 %vm5228_vm0, %v5229_v2 }
0x1665   :  { %4974 = vmatprep.subr.bf16.mxu1 %v5227_v1  ;;  %4979 = vmatpush3.bf16.msra.mxu0 %v5405_v38 }
0x1666   :  { %4980 = vmatprep.subr.bf16.mxu0 %v5227_v1  ;;  %4704 = vmatprep.mubr.msk.f32.mxu0 %vm5228_vm0, %v5229_v2 }
0x1668   :  { %4976 = vmatpush3.bf16.msra.mxu1 %v5559_v8 }
0x1669   :  { %4983 = vmatprep.subr.bf16.mxu1 %v5227_v1  ;;  %4982 = vmatpush3.bf16.msra.mxu0 %v5421_v43 }
0x166a   :  { %v3286_v53 = vpop.permute.xlu0 %3285  ;;  %4989 = vmatprep.subr.bf16.mxu0 %v5227_v1 }
0x166b   :  { %4694 = vmatmul.mubr.msk.f32.vlgmr.msra.gmra.mrb[34].mxu1 %vm269_vm4, %v3286_v53 }
0x166c   :  { %4985 = vmatpush3.bf16.msra.mxu1 %v5464_v0  ;;  %4715 = vmatprep.mubr.msk.f32.mxu1 %vm5228_vm0, %v5229_v2 }
0x166d   :  { %4986 = vmatprep.subr.bf16.mxu1 %v5227_v1 }
0x1670   :  { %4988 = vmatpush3.bf16.msra.mxu1 %v5475_v6 }
0x1671   :  { %4995 = vmatprep.subr.bf16.mxu1 %v5227_v1 }
0x172e   :  { %v3005_v38 = vpop.f32.mrb[30].mxu1  ;;  %v3105_v55 = vpop.f32.mrb[36].mxu0 }
0x172f   :  { %v4651_v56 = vpop.f32.mrb[31].mxu1  ;;  %v4662_v43 = vpop.f32.mrb[37].mxu0  ;;  %v3016_v0 = vadd.f32 %v3005_v38, %v5382_v17  ;;  %v3106_v44 = vadd.f32 %v5790_v35, %v3105_v55  ;;  %v3009_v13 = vadd.f32 %v3005_v38, %v2933_v10 }
0x1731   :  { %v4076_v18 = vmul.f32 -1.442695, %v3009_v13 }
0x1736   :  { %v3180_v58 = vpop.f32.mrb[32].mxu1  ;;  %v3280_v49 = vpop.f32.mrb[38].mxu0 }
0x1737   :  { %v3191_v60 = vadd.f32 %v3180_v58, %v5497_v14  ;;  %v4673_v42 = vpop.f32.mrb[33].mxu1  ;;  %v4684_v62 = vpop.f32.mrb[39].mxu0  ;;  %v3184_v46 = vadd.f32 %v3180_v58, %v3106_v44  ;;  %v3281_v16 = vadd.f32 %v5863_v59, %v3280_v49 }
0x1739   :  { %3193 = vrot.lane.b32.xlu1 %v3191_v60, %s5231_s2  ;;  %v4079_v15 = vmul.f32 -1.442695, %v3184_v46 }
0x173b   :  { %5137 = vpow2.f32 %v4079_v15 }
0x173c   :  { %5139 = vpow2.f32 %v4076_v18 }
0x173d   :  { %3018 = vrot.lane.b32.xlu1 %v3016_v0, %s5231_s2 }
0x173e   :  { %v3355_v63 = vpop.f32.mrb[34].mxu1 }
0x173f   :  { %v3366_v6 = vadd.f32 %v3355_v63, %v5583_v23  ;;  %v4695_v4 = vpop.f32.mrb[35].mxu1  ;;  %v3359_v19 = vadd.f32 %v3355_v63, %v3281_v16 }
0x1741   :  { %3368 = vrot.lane.b32.xlu0 %v3366_v6, %s5231_s2  ;;  %v4082_v17 = vmul.f32 -1.442695, %v3359_v19 }
0x1743   :  { %5141 = vpow2.f32 %v4082_v17 }
0x1745   :  { %v5138_v52 = vpop.eup %5137 }
0x1746   :  { %v3188_v20 = vadd.f32 1.0, %v5138_v52  ;;  %v5140_v21 = vpop.eup %5139 }
0x1747   :  { %v3013_v22 = vadd.f32 1.0, %v5140_v21 }
0x1748   :  { %5143 = vrcp.f32 %v3188_v20 }
0x1749   :  { %5145 = vrcp.f32 %v3013_v22 }
0x174d   :  { %v5142_v5 = vpop.eup %5141 }
0x174e   :  { %v3363_v24 = vadd.f32 1.0, %v5142_v5 }
0x1750   :  { %5147 = vrcp.f32 %v3363_v24 }
0x1752   :  { %v5144_v26 = vpop.eup %5143 }
0x1753   :  { %v5146_v11 = vpop.eup %5145 }
0x175a   :  { %v5148_v47 = vpop.eup %5147 }
0x17ab   :  { %v3194_v28 = vpop.permute.xlu1 %3193 }
0x17ac   :  { %v3196_v7 = vmul.f32 %v5144_v26, %v3194_v28 }
0x17ae   :  { %3198 = vrot.lane.b32.xlu0 %v3196_v7, %s5231_s2 }
0x17af   :  { %v3019_v31 = vpop.permute.xlu1 %3018 }
0x17b0   :  { %v3021_v33 = vmul.f32 %v5146_v11, %v3019_v31 }
0x17b2   :  { %3023 = vrot.lane.b32.xlu0 %v3021_v33, %s5231_s2 }
0x17b3   :  { %v3369_v34 = vpop.permute.xlu0 %3368 }
0x17b4   :  { %v3371_v9 = vmul.f32 %v5148_v47, %v3369_v34 }
0x17b6   :  { %3373 = vrot.lane.b32.xlu1 %v3371_v9, %s5231_s2 }
0x1820   :  { %v3199_v36 = vpop.permute.xlu0 %3198 }
0x1821   :  { %v3201_v12 = vadd.f32 %v3199_v36, %v3106_v44 }
0x1823   :  { %5149 = vtanh.f32 %v3201_v12 }
0x1824   :  { %v3024_v37 = vpop.permute.xlu0 %3023 }
0x1825   :  { %v3026_v54 = vadd.f32 %v3024_v37, %v2933_v10 }
0x1827   :  { %5151 = vtanh.f32 %v3026_v54 }
0x1828   :  { %v3374_v29 = vpop.permute.xlu1 %3373 }
0x1829   :  { %v3376_v39 = vadd.f32 %v3374_v29, %v3281_v16 }
0x182b   :  { %5153 = vtanh.f32 %v3376_v39 }
0x182d   :  { %v5150_v40 = vpop.eup %5149 }
0x182e   :  { %v3203_v41 = vsub.f32 %v5882_v27, %v5150_v40 }
0x1830   :  { %3205 = vrot.lane.b32.xlu1 %v3203_v41, %s5230_s23 }
0x1831   :  { %v5152_v30 = vpop.eup %5151 }
0x1832   :  { %v3028_v32 = vsub.f32 %v5878_v25, %v5152_v30 }
0x1834   :  { %3030 = vrot.lane.b32.xlu1 %v3028_v32, %s5230_s23 }
0x1835   :  { %v5154_v45 = vpop.eup %5153 }
0x1836   :  { %v3378_v50 = vsub.f32 %v5886_v48, %v5154_v45 }
0x1838   :  { %3380 = vrot.lane.b32.xlu0 %v3378_v50, %s5230_s23 }
0x18a2   :  { %v3206_v51 = vpop.permute.xlu1 %3205 }
0x18a3   :  { %v3208_v53 = vmul.f32 %v5144_v26, %v3206_v51 }
0x18a5   :  { %3210 = vrot.lane.b32.xlu0 %v3208_v53, %s5232_s4 }
0x18a6   :  { %v3031_v38 = vpop.permute.xlu1 %3030 }
0x18a7   :  { %v3033_v55 = vmul.f32 %v5146_v11, %v3031_v38 }
0x18a9   :  { %3035 = vrot.lane.b32.xlu0 %v3033_v55, %s5232_s4 }
0x18aa   :  { %v3381_v27 = vpop.permute.xlu0 %3380 }
0x18ab   :  { %v3383_v56 = vmul.f32 %v5148_v47, %v3381_v27 }
0x18ad   :  { %3385 = vrot.lane.b32.xlu1 %v3383_v56, %s5232_s4 }
0x1917   :  { %v3211_v25 = vpop.permute.xlu0 %3210 }
0x1918   :  { %v5945_v43 = vadd.f32 %v5150_v40, %v3211_v25 }
0x191a   :  { %3465 = vrot.lane.b32.xlu1 %v5945_v43, %s5231_s2 }
0x191b   :  { %v3036_v48 = vpop.permute.xlu0 %3035 }
0x191c   :  { %v3038_v58 = vadd.f32 %v5152_v30, %v3036_v48 }
0x191e   :  { %3390 = vrot.lane.b32.xlu1 %v3038_v58, %s5231_s2 }
0x191f   :  { %v3386_v49 = vpop.permute.xlu1 %3385 }
0x1920   :  { %v5950_v60 = vadd.f32 %v5154_v45, %v3386_v49 }
0x1922   :  { %3640 = vrot.lane.b32.xlu0 %v5950_v60, %s5231_s2 }
0x198c   :  { %v3466_v42 = vpop.permute.xlu1 %3465 }
0x198d   :  { %4716 = vmatmul.mubr.msk.f32.vlgmr.msra.gmra.mrb[36].mxu1 %vm269_vm4, %v3466_v42 }
0x198e   :  { %4997 = vmatpush3.bf16.msra.mxu1 %v5552_v3  ;;  %4737 = vmatprep.mubr.msk.f32.mxu1 %vm5228_vm0, %v5229_v2 }
0x198f   :  { %4998 = vmatprep.subr.bf16.mxu1 %v5227_v1 }
0x1990   :  { %v3391_v62 = vpop.permute.xlu1 %3390 }
0x1991   :  { %4705 = vmatmul.mubr.msk.f32.vlgmr.msra.gmra.mrb[40].mxu0 %vm269_vm4, %v3391_v62 }
0x1992   :  { %4991 = vmatpush3.bf16.msra.mxu0 %v5530_v57  ;;  %5000 = vmatpush3.bf16.msra.mxu1 %v5559_v8 }
0x1993   :  { %4992 = vmatprep.subr.bf16.mxu0 %v5227_v1  ;;  %4726 = vmatprep.mubr.msk.f32.mxu0 %vm5228_vm0, %v5229_v2 }
0x1994   :  { %v3641_v0 = vpop.permute.xlu0 %3640  ;;  %5007 = vmatprep.subr.bf16.mxu1 %v5227_v1 }
0x1995   :  { %4738 = vmatmul.mubr.msk.f32.vlgmr.msra.gmra.mrb[38].mxu1 %vm269_vm4, %v3641_v0  ;;  %v3925_v0 = vld [vmem:[%s6035_s10 + $0x8] sm:$0xff] }
0x1996   :  { %4994 = vmatpush3.bf16.msra.mxu0 %v5542_v61  ;;  %5009 = vmatpush3.bf16.msra.mxu1 %v5552_v3 }
0x1997   :  { %5001 = vmatprep.subr.bf16.mxu0 %v5227_v1  ;;  %5010 = vmatprep.subr.bf16.mxu1 %v5227_v1 }
0x1998   :  { %4759 = vmatprep.mubr.msk.f32.mxu1 %vm5228_vm0, %v5229_v2 }
0x1999   :  { %4727 = vmatmul.mubr.msk.f32.vlgmr.msra.gmra.mrb[42].mxu0 %vm269_vm4, %v3466_v42 }
0x199a   :  { %5003 = vmatpush3.bf16.msra.mxu0 %v5530_v57  ;;  %4748 = vmatprep.mubr.msk.f32.mxu0 %vm5228_vm0, %v5229_v2 }
0x199b   :  { %5004 = vmatprep.subr.bf16.mxu0 %v5227_v1  ;;  %5012 = vmatpush3.bf16.msra.mxu1 %v5559_v8 }
0x199e   :  { %5006 = vmatpush3.bf16.msra.mxu0 %v5542_v61 }
0x199f   :  { %5013 = vmatprep.subr.bf16.mxu0 %v5227_v1 }
0x1a60   :  { %v3535_v3 = vpop.f32.mrb[36].mxu1 }
0x1a61   :  { %v3546_v63 = vadd.f32 %v3535_v3, %v5497_v14  ;;  %v4717_v6 = vpop.f32.mrb[37].mxu1 }
0x1a62   :  { %v3927_v6 = vld [vmem:[%s6035_s10 + $0x18] sm:$0xff] }
0x1a63   :  { %3548 = vrot.lane.b32.xlu1 %v3546_v63, %s5231_s2 }
0x1a64   :  { %v3460_v4 = vpop.f32.mrb[40].mxu0 }
0x1a65   :  { %v4706_v44 = vpop.f32.mrb[41].mxu0  ;;  %v3461_v61 = vadd.f32 %v5790_v35, %v3460_v4 }
0x1a67   :  { %v3539_v15 = vadd.f32 %v3535_v3, %v3461_v61  ;;  %v3926_v3 = vld [vmem:[%s6035_s10 + $0x10] sm:$0xff] }
0x1a68   :  { %v3710_v57 = vpop.f32.mrb[38].mxu1  ;;  %v5017_v4 = vpack.c.bf16 %v3927_v6, %v3926_v3 }
0x1a69   :  { %v3721_v46 = vadd.f32 %v3710_v57, %v5583_v23  ;;  %v4739_v10 = vpop.f32.mrb[39].mxu1  ;;  %v4085_v16 = vmul.f32 -1.442695, %v3539_v15 }
0x1a6b   :  { %3723 = vrot.lane.b32.xlu0 %v3721_v46, %s5231_s2  ;;  %5155 = vpow2.f32 %v4085_v16 }
0x1a6c   :  { %v3635_v13 = vpop.f32.mrb[42].mxu0 }
0x1a6d   :  { %v4728_v8 = vpop.f32.mrb[43].mxu0  ;;  %v3636_v18 = vadd.f32 %v5863_v59, %v3635_v13 }
0x1a6e   :  { %v4092_v8 = vld [vmem:[#allocation3] ss:$0 sm:$0xff] }
0x1a6f   :  { %v3714_v14 = vadd.f32 %v3710_v57, %v3636_v18 }
0x1a71   :  { %v4088_v19 = vmul.f32 -1.442695, %v3714_v14 }
0x1a73   :  { %5157 = vpow2.f32 %v4088_v19 }
0x1a75   :  { %v5156_v17 = vpop.eup %5155 }
0x1a76   :  { %v3543_v52 = vadd.f32 1.0, %v5156_v17 }
0x1a78   :  { %5159 = vrcp.f32 %v3543_v52 }
0x1a7d   :  { %v5158_v20 = vpop.eup %5157 }
0x1a7e   :  { %v3718_v21 = vadd.f32 1.0, %v5158_v20 }
0x1a80   :  { %5161 = vrcp.f32 %v3718_v21 }
0x1a82   :  { %v5160_v22 = vpop.eup %5159 }
0x1a8a   :  { %v5162_v35 = vpop.eup %5161 }
0x1ad5   :  { %v3549_v5 = vpop.permute.xlu1 %3548 }
0x1ad6   :  { %v3551_v24 = vmul.f32 %v5160_v22, %v3549_v5 }
0x1ad8   :  { %3553 = vrot.lane.b32.xlu1 %v3551_v24, %s5231_s2 }
0x1add   :  { %v3724_v26 = vpop.permute.xlu0 %3723 }
0x1ade   :  { %v3726_v28 = vmul.f32 %v5162_v35, %v3724_v26 }
0x1ae0   :  { %3728 = vrot.lane.b32.xlu0 %v3726_v28, %s5231_s2 }
0x1b4a   :  { %v3554_v7 = vpop.permute.xlu1 %3553 }
0x1b4b   :  { %v3556_v11 = vadd.f32 %v3554_v7, %v3461_v61 }
0x1b4d   :  { %5163 = vtanh.f32 %v3556_v11 }
0x1b52   :  { %v3729_v31 = vpop.permute.xlu0 %3728 }
0x1b53   :  { %v3731_v33 = vadd.f32 %v3729_v31, %v3636_v18 }
0x1b55   :  { %5165 = vtanh.f32 %v3731_v33 }
0x1b57   :  { %v5164_v47 = vpop.eup %5163 }
0x1b58   :  { %v3558_v34 = vsub.f32 %v5945_v43, %v5164_v47 }
0x1b5a   :  { %3560 = vrot.lane.b32.xlu1 %v3558_v34, %s5230_s23 }
0x1b5f   :  { %v5166_v9 = vpop.eup %5165 }
0x1b60   :  { %v3733_v36 = vsub.f32 %v5950_v60, %v5166_v9 }
0x1b62   :  { %3735 = vrot.lane.b32.xlu0 %v3733_v36, %s5230_s23 }
0x1bcc   :  { %v3561_v12 = vpop.permute.xlu1 %3560 }
0x1bcd   :  { %v3563_v37 = vmul.f32 %v5160_v22, %v3561_v12 }
0x1bcf   :  { %3565 = vrot.lane.b32.xlu1 %v3563_v37, %s5232_s4 }
0x1bd4   :  { %v3736_v54 = vpop.permute.xlu0 %3735 }
0x1bd5   :  { %v3738_v29 = vmul.f32 %v5162_v35, %v3736_v54 }
0x1bd7   :  { %3740 = vrot.lane.b32.xlu0 %v3738_v29, %s5232_s4 }
0x1c41   :  { %v3566_v39 = vpop.permute.xlu1 %3565 }
0x1c42   :  { %v3568_v40 = vadd.f32 %v5164_v47, %v3566_v39 }
0x1c44   :  { %3745 = vrot.lane.b32.xlu1 %v3568_v40, %s5231_s2 }
0x1c49   :  { %v3741_v41 = vpop.permute.xlu0 %3740 }
0x1c4a   :  { %v3743_v30 = vadd.f32 %v5166_v9, %v3741_v41 }
0x1c4c   :  { %3820 = vrot.lane.b32.xlu0 %v3743_v30, %s5231_s2 }
0x1cb6   :  { %v3746_v32 = vpop.permute.xlu1 %3745 }
0x1cb7   :  { %4749 = vmatmul.mubr.msk.f32.vlgmr.msra.gmra.mrb[44].mxu0 %vm269_vm4, %v3746_v32 }
0x1cb8   :  { %4770 = vmatprep.mubr.msk.f32.mxu0 %vm5228_vm0, %v5229_v2 }
0x1cbe   :  { %v3821_v45 = vpop.permute.xlu0 %3820 }
0x1cbf   :  { %4760 = vmatmul.mubr.msk.f32.vlgmr.msra.gmra.mrb[40].mxu1 %vm269_vm4, %v3821_v45 }
0x1d8a   :  { %v3815_v50 = vpop.f32.mrb[44].mxu0 }
0x1d8b   :  { %v4750_v51 = vpop.f32.mrb[45].mxu0  ;;  %v3816_v27 = vadd.f32 %v5863_v59, %v3815_v50  ;;  %v3924_v59 = vld [vmem:[%s6035_s10] sm:$0xff] }
0x1d8c   :  { %v5014_v63 = vpack.c.bf16 %v3925_v0, %v3924_v59 }
0x1d8e   :  { %5015 = vmatpush3.bf16.msra.mxu0 %v5014_v63 }
0x1d8f   :  { %5016 = vmatprep.subr.bf16.mxu0 %v5227_v1 }
0x1d92   :  { %v3890_v53 = vpop.f32.mrb[40].mxu1  ;;  %5018 = vmatpush3.bf16.msra.mxu0 %v5017_v4 }
0x1d93   :  { %v3901_v38 = vadd.f32 %v3890_v53, %v5583_v23  ;;  %v4761_v55 = vpop.f32.mrb[41].mxu1  ;;  %v3894_v56 = vadd.f32 %v3890_v53, %v3816_v27 }
0x1d95   :  { %3903 = vrot.lane.b32.xlu0 %v3901_v38, %s5231_s2  ;;  %v4091_v25 = vmul.f32 -1.442695, %v3894_v56 }
0x1d97   :  { %5167 = vpow2.f32 %v4091_v25 }
0x1da1   :  { %v5168_v43 = vpop.eup %5167 }
0x1da2   :  { %v3898_v48 = vadd.f32 1.0, %v5168_v43 }
0x1da4   :  { %5169 = vrcp.f32 %v3898_v48 }
0x1dae   :  { %v5170_v2 = vpop.eup %5169 }
0x1e07   :  { %v3904_v58 = vpop.permute.xlu0 %3903 }
0x1e08   :  { %v3906_v49 = vmul.f32 %v5170_v2, %v3904_v58 }
0x1e0a   :  { %3908 = vrot.lane.b32.xlu1 %v3906_v49, %s5231_s2 }
0x1e7c   :  { %v3909_v60 = vpop.permute.xlu1 %3908 }
0x1e7d   :  { %v3911_v42 = vadd.f32 %v3909_v60, %v3816_v27 }
0x1e7f   :  { %5171 = vtanh.f32 %v3911_v42 }
0x1e89   :  { %v5172_v23 = vpop.eup %5171 }
0x1e8a   :  { %v3913_v62 = vsub.f32 %v3743_v30, %v5172_v23 }
0x1e8c   :  { %3915 = vrot.lane.b32.xlu0 %v3913_v62, %s5230_s23 }
0x1efe   :  { %v3916_v44 = vpop.permute.xlu0 %3915 }
0x1eff   :  { %v3918_v57 = vmul.f32 %v5170_v2, %v3916_v44 }
0x1f01   :  { %3920 = vrot.lane.b32.xlu1 %v3918_v57, %s5232_s4 }
0x1f73   :  { %v3921_v46 = vpop.permute.xlu1 %3920 }
0x1f74   :  { %v3923_v10 = vadd.f32 %v5172_v23, %v3921_v46 }
0x1f76   :  { %3936 = vrot.lane.b32.xlu0 %v3923_v10, %s5231_s2 }
0x1fe8   :  { %v3937_v13 = vpop.permute.xlu0 %3936 }
0x1fe9   :  { %4771 = vmatmul.mubr.msk.f32.vlgmr.msra.gmra.mrb[46].mxu0 %vm269_vm4, %v3937_v13 }
0x20bc   :  { %v4006_v61 = vpop.f32.mrb[46].mxu0 }
0x20bd   :  { %v4007_v15 = vadd.f32 %v4092_v8, %v4006_v61  ;;  %v4772_v16 = vpop.f32.mrb[47].mxu0 }
0x20bf   :  { %4011 = vst.msk [vmem:[%s6037_s12] sm:$0xff] %vm4010_vm5, %v4007_v15 }
0x20c0   :  { %4016 = vsyncpa [#allocation5], 1 }
0x20c1   :  { %4017 = vsyncpa [#allocation7], 1 }

</bundles_post_ra>
